<compile_context>
chip_gen: v5e
topology: v5e:2x2
jax: 0.10.0
libtpu: 0.0.40
codegen_flags: <defaults>
</compile_context>

<pallas_src>
import math
import functools

import jax
import jax.numpy as jnp
from jax import lax
from jax.experimental import pallas as pl
from jax.experimental.pallas import tpu as pltpu


# --------------------------------------------------------------------------------------
# Fused kernel: style linear + modulated conv + skip conv + BN + blend + activations
# --------------------------------------------------------------------------------------
def _fused_kernel(B, Cin, Cout, H, W, K, L,
                  wlat_ref, wst_ref, bst_ref, x_ref, sk_ref, mask_ref,
                  wmod_ref, wconv_ref, bconv_ref, gamma_ref, beta_ref, blend_ref,
                  out_ref, imx_ref, ims_ref):
    f32 = jnp.float32
    HW = H * W

    x = x_ref[...]            # (B*Cin, HW)   row r = b*Cin + i
    sk = sk_ref[...]          # (B*Cin, HW)
    wmod = wmod_ref[...]      # (Cout, K*K*Cin) equalized scale folded; lane c = tap*Cin+i
    wconv = wconv_ref[...]    # (Cout, K*K*Cin)
    wst = wst_ref[...]        # (L, K*K*Cin)    style weight, tap-tiled
    bst = bst_ref[...]        # (1, K*K*Cin)    style bias (init 1.0), tap-tiled

    # ---- style s (tap-tiled) + modulated & demodulated effective weights, per batch ----
    w_eff = []
    for b in range(B):
        s_t = bst                                                 # (1, KKC)
        for l in range(L):
            s_t = s_t + wlat_ref[b, l] * wst[l:l + 1, :]          # scalar (SMEM) * row
        wm = wmod * s_t                                           # modulate   (Cout, KKC)
        # lane reduce over the logical 36 lanes (36->128 padding is masked by Mosaic)
        sig_inv = lax.rsqrt(jnp.sum(wm * wm, axis=-1, keepdims=True) + 1e-8)
        w_eff.append(wm * sig_inv)                                # demodulate (Cout, KKC)

    # ---- im2col: 9 rolled + border-masked taps -> VMEM scratch (K*K*Cin, B*HW) ----
    # Rolls use the XLU slot, the stores use the vst slots; the contraction itself goes
    # to the MXU below (the old 72-iteration broadcast-FMA loop is gone).
    for kh in range(K):
        for kw in range(K):
            t = kh * K + kw
            off = (kh - 1) * W + (kw - 1)                         # tap offset, flat H*W
            rx = x if off == 0 else pltpu.roll(x, (-off) % HW, axis=1)
            rs = sk if off == 0 else pltpu.roll(sk, (-off) % HW, axis=1)
            if not (kh == 1 and kw == 1):
                m = mask_ref[t:t + 1, :]                          # zero-pad border mask
                rx = rx * m
                rs = rs * m
            for b in range(B):
                imx_ref[t * Cin:(t + 1) * Cin, b * HW:(b + 1) * HW] = rx[b * Cin:(b + 1) * Cin, :]
                ims_ref[t * Cin:(t + 1) * Cin, b * HW:(b + 1) * HW] = rs[b * Cin:(b + 1) * Cin, :]

    # ---- MXU contractions: per batch, (Cout, KKC) @ (KKC, HW) ----
    # fp32 contract precision so the result matches the fp32 reference conv.
    prec = lax.Precision.HIGHEST
    bconv = bconv_ref[...]                                        # (Cout, 1)
    ymod, ysk = [], []
    for b in range(B):
        imx_b = imx_ref[:, b * HW:(b + 1) * HW]                   # (KKC, HW) lane-aligned
        ims_b = ims_ref[:, b * HW:(b + 1) * HW]
        ymod.append(jnp.dot(w_eff[b], imx_b, precision=prec, preferred_element_type=f32))
        ysk.append(jnp.dot(wconv, ims_b, precision=prec, preferred_element_type=f32) + bconv)

    # ---- BatchNorm (training-mode batch stats, biased var, eps=1e-5) ----
    # Per-channel stats = lane reduce per batch + add across the B partial sums.
    # TODO(synk): BatchNorm running-stat updates (training-time side effect) not modeled.
    inv_n = 1.0 / float(B * HW)
    mean = sum(jnp.sum(ysk[b], axis=-1, keepdims=True) for b in range(B)) * inv_n   # (Cout,1)
    d = [ysk[b] - mean for b in range(B)]
    var = sum(jnp.sum(d[b] * d[b], axis=-1, keepdims=True) for b in range(B)) * inv_n
    scale = lax.rsqrt(var + 1e-5) * gamma_ref[...]                # (Cout, 1)
    beta = beta_ref[...]                                          # (Cout, 1)
    wb = blend_ref[...]                                           # (Cout, 1) learned blend

    # ---- skip LeakyReLU + blend + final LeakyReLU; lane-dense (B*Cout, HW) store ----
    for b in range(B):
        a = d[b] * scale + beta
        skn = jnp.maximum(a, 0.2 * a)                             # LeakyReLU(0.2)
        z = wb * ymod[b] + (1.0 - wb) * skn
        out_ref[b * Cout:(b + 1) * Cout, :] = jnp.maximum(z, 0.2 * z)


# --------------------------------------------------------------------------------------
# Parameters (deterministic, shapes per the PyTorch __init__)
# --------------------------------------------------------------------------------------
def init_params(key, latent_dim, in_features, out_features, k=3):
    ks = jax.random.split(key, 4)
    c_style = 1.0 / math.sqrt(latent_dim)
    c_mod = 1.0 / math.sqrt(in_features * k * k)
    return dict(
        # EqualizedLinear(latent_dim -> in_features), equalized scale folded in
        w_style=jax.random.normal(ks[0], (in_features, latent_dim), jnp.float32) * c_style,
        b_style=jnp.ones((1, in_features), jnp.float32),             # bias init = 1.0
        # Conv2dWeightModulate weight (equalized scale folded in)
        w_mod=jax.random.normal(ks[1], (out_features, in_features, k, k), jnp.float32) * c_mod,
        # nn.Conv2d weight / bias (deterministic synthetic init)
        w_conv=jax.random.normal(ks[2], (out_features, in_features, k, k), jnp.float32)
        * (1.0 / math.sqrt(in_features * k * k)),
        b_conv=jax.random.normal(ks[3], (1, out_features), jnp.float32) * 0.1,
        # BatchNorm2d affine params
        bn_gamma=jnp.ones((1, out_features), jnp.float32),
        bn_beta=jnp.zeros((1, out_features), jnp.float32),
        # self.weights = 0.5 * ones(out_features)
        blend_w=jnp.full((1, out_features), 0.5, jnp.float32),
    )


# --------------------------------------------------------------------------------------
# Wrapper (tiny weight re-layouts only; activations are pure flat reshapes, no concat /
# transpose bookend ops)
# --------------------------------------------------------------------------------------
@jax.jit
def unet_style_block(params, x_nchw, w_lat, skip_nchw):
    B, Cin, H, W = x_nchw.shape
    Cout, _, K, _ = params["w_mod"].shape
    L = w_lat.shape[1]
    HW = H * W
    assert K == 3, "kernel assumes 3x3 taps"
    assert HW % 128 == 0, "flat-HW roll trick needs a lane-multiple spatial plane"

    # activations: NCHW -> (B*Cin, H*W) rows (pure reshape)
    x2 = x_nchw.reshape(B * Cin, HW)
    sk2 = skip_nchw.reshape(B * Cin, HW)

    # weights: output channels on sublanes, (tap, cin) on lanes
    wmod_t = jnp.transpose(params["w_mod"], (0, 2, 3, 1)).reshape(Cout, K * K * Cin)
    wconv_t = jnp.transpose(params["w_conv"], (0, 2, 3, 1)).reshape(Cout, K * K * Cin)
    wst_t = jnp.tile(params["w_style"].T[:, None, :], (1, K * K, 1)).reshape(L, K * K * Cin)
    bst_t = jnp.tile(params["b_style"], (1, K * K))                 # (1, K*K*Cin)
    bconv_c = params["b_conv"].T                                    # (Cout, 1)
    gamma_c = params["bn_gamma"].T
    beta_c = params["bn_beta"].T
    blend_c = params["blend_w"].T

    # per-tap validity masks for the rolled conv taps (constant, folded by XLA)
    hidx = lax.broadcasted_iota(jnp.int32, (H, W), 0)
    widx = lax.broadcasted_iota(jnp.int32, (H, W), 1)
    mask_list = []
    for kh in range(K):
        for kw in range(K):
            dh, dw = kh - 1, kw - 1
            m = (hidx + dh >= 0) & (hidx + dh <= H - 1) & (widx + dw >= 0) & (widx + dw <= W - 1)
            mask_list.append(m.reshape(HW))
    masks = jnp.stack(mask_list, axis=0).astype(jnp.float32)        # (K*K, HW)

    kernel = functools.partial(_fused_kernel, B, Cin, Cout, H, W, K, L)
    vmem = pltpu.MemorySpace.VMEM
    smem = pltpu.MemorySpace.SMEM
    out2 = pl.pallas_call(
        kernel,
        out_shape=jax.ShapeDtypeStruct((B * Cout, HW), jnp.float32),
        in_specs=[
            pl.BlockSpec(memory_space=smem),    # w_lat (scalars)
            pl.BlockSpec(memory_space=vmem),    # wst_t
            pl.BlockSpec(memory_space=vmem),    # bst_t
            pl.BlockSpec(memory_space=vmem),    # x2
            pl.BlockSpec(memory_space=vmem),    # sk2
            pl.BlockSpec(memory_space=vmem),    # masks
            pl.BlockSpec(memory_space=vmem),    # wmod_t
            pl.BlockSpec(memory_space=vmem),    # wconv_t
            pl.BlockSpec(memory_space=vmem),    # bconv_c
            pl.BlockSpec(memory_space=vmem),    # gamma_c
            pl.BlockSpec(memory_space=vmem),    # beta_c
            pl.BlockSpec(memory_space=vmem),    # blend_c
        ],
        out_specs=pl.BlockSpec(memory_space=vmem),
        scratch_shapes=[
            pltpu.VMEM((K * K * Cin, B * HW), jnp.float32),   # im2col(x)
            pltpu.VMEM((K * K * Cin, B * HW), jnp.float32),   # im2col(skip)
        ],
    )(w_lat, wst_t, bst_t, x2, sk2, masks, wmod_t, wconv_t, bconv_c, gamma_c, beta_c, blend_c)

    # (B*Cout, H*W) -> NCHW: pure reshape, no transpose.
    return out2.reshape(B, Cout, H, W)


# --------------------------------------------------------------------------------------
# Pure-JAX reference (mirrors the PyTorch forward, training-mode BatchNorm)
# --------------------------------------------------------------------------------------
def ref_forward(params, x_nchw, w_lat, skip_nchw):
    B, Cin, H, W = x_nchw.shape
    Cout = params["w_mod"].shape[0]
    s = w_lat @ params["w_style"].T + params["b_style"]                  # (B, Cin)
    w = params["w_mod"][None] * s[:, None, :, None, None]                # (B, Cout, Cin, 3, 3)
    sigma_inv = lax.rsqrt(jnp.sum(w ** 2, axis=(2, 3, 4), keepdims=True) + 1e-8)
    w = w * sigma_inv
    x2 = x_nchw.reshape(1, B * Cin, H, W)
    wr = w.reshape(B * Cout, Cin, 3, 3)
    y = lax.conv_general_dilated(x2, wr, (1, 1), "SAME",
                                 dimension_numbers=("NCHW", "OIHW", "NCHW"),
                                 feature_group_count=B).reshape(B, Cout, H, W)

    sk = lax.conv_general_dilated(skip_nchw, params["w_conv"], (1, 1), "SAME",
                                  dimension_numbers=("NCHW", "OIHW", "NCHW"))
    sk = sk + params["b_conv"].reshape(1, Cout, 1, 1)
    mean = sk.mean(axis=(0, 2, 3), keepdims=True)
    var = ((sk - mean) ** 2).mean(axis=(0, 2, 3), keepdims=True)
    sk = (sk - mean) * lax.rsqrt(var + 1e-5)
    sk = sk * params["bn_gamma"].reshape(1, Cout, 1, 1) + params["bn_beta"].reshape(1, Cout, 1, 1)
    sk = jnp.where(sk >= 0, sk, 0.2 * sk)
    wb = params["blend_w"].reshape(1, Cout, 1, 1)
    z = wb * y + (1.0 - wb) * sk
    return jnp.where(z >= 0, z, 0.2 * z)


if __name__ == "__main__":
    B, L, Cin, Cout, H, W = 2, 8, 4, 8, 16, 16
    key = jax.random.PRNGKey(0)
    kp, kx, kw, ks = jax.random.split(key, 4)
    params = init_params(kp, L, Cin, Cout)
    x = jax.random.normal(kx, (B, Cin, H, W), jnp.float32)
    w_lat = jax.random.normal(kw, (B, L), jnp.float32)
    skip = jax.random.normal(ks, (B, Cin, H, W), jnp.float32)

    out = jax.block_until_ready(unet_style_block(params, x, w_lat, skip))
    assert out.shape == (B, Cout, H, W)

    ref = ref_forward(params, x, w_lat, skip)
    max_err = float(jnp.max(jnp.abs(out - ref)))
    assert jnp.allclose(out, ref, atol=1e-3, rtol=1e-3), f"max abs err {max_err}"
    print("KERNEL_OK")
</pallas_src>

<mosaic_0001>
module attributes {stable_mosaic.version = 11 : i64} {
  func.func @_fused_kernel(%arg0: memref<2x8xf32, #tpu.memory_space<smem>>, %arg1: memref<8x36xf32, #tpu.memory_space<vmem>>, %arg2: memref<1x36xf32, #tpu.memory_space<vmem>>, %arg3: memref<8x256xf32, #tpu.memory_space<vmem>>, %arg4: memref<8x256xf32, #tpu.memory_space<vmem>>, %arg5: memref<9x256xf32, #tpu.memory_space<vmem>>, %arg6: memref<8x36xf32, #tpu.memory_space<vmem>>, %arg7: memref<8x36xf32, #tpu.memory_space<vmem>>, %arg8: memref<8x1xf32, #tpu.memory_space<vmem>>, %arg9: memref<8x1xf32, #tpu.memory_space<vmem>>, %arg10: memref<8x1xf32, #tpu.memory_space<vmem>>, %arg11: memref<8x1xf32, #tpu.memory_space<vmem>>, %arg12: memref<16x256xf32, #tpu.memory_space<vmem>>, %arg13: memref<36x512xf32, #tpu.memory_space<vmem>>, %arg14: memref<36x512xf32, #tpu.memory_space<vmem>>) attributes {dimension_semantics = [], scalar_prefetch = 0 : i64, scratch_operands = 2 : i64, tpu.core_type = #tpu.core_type<tc>} {
    %c0 = arith.constant 0 : index
    %c0_0 = arith.constant 0 : index
    %0 = vector.load %arg3[%c0, %c0_0] : memref<8x256xf32, #tpu.memory_space<vmem>>, vector<8x256xf32>
    %c0_1 = arith.constant 0 : index
    %c0_2 = arith.constant 0 : index
    %1 = vector.load %arg4[%c0_1, %c0_2] : memref<8x256xf32, #tpu.memory_space<vmem>>, vector<8x256xf32>
    %c0_3 = arith.constant 0 : index
    %c0_4 = arith.constant 0 : index
    %2 = vector.load %arg6[%c0_3, %c0_4] : memref<8x36xf32, #tpu.memory_space<vmem>>, vector<8x36xf32>
    %c0_5 = arith.constant 0 : index
    %c0_6 = arith.constant 0 : index
    %3 = vector.load %arg7[%c0_5, %c0_6] : memref<8x36xf32, #tpu.memory_space<vmem>>, vector<8x36xf32>
    %c0_7 = arith.constant 0 : index
    %c0_8 = arith.constant 0 : index
    %4 = vector.load %arg1[%c0_7, %c0_8] : memref<8x36xf32, #tpu.memory_space<vmem>>, vector<8x36xf32>
    %c0_9 = arith.constant 0 : index
    %c0_10 = arith.constant 0 : index
    %5 = vector.load %arg2[%c0_9, %c0_10] : memref<1x36xf32, #tpu.memory_space<vmem>>, vector<1x36xf32>
    %c0_11 = arith.constant 0 : index
    %c0_12 = arith.constant 0 : index
    %6 = memref.load %arg0[%c0_11, %c0_12] : memref<2x8xf32, #tpu.memory_space<smem>>
    %7 = vector.extract_strided_slice %4 {offsets = [0, 0], sizes = [1, 36], strides = [1, 1]} : vector<8x36xf32> to vector<1x36xf32>
    %8 = vector.broadcast %6 : f32 to vector<1x36xf32>
    %9 = arith.mulf %8, %7 : vector<1x36xf32>
    %10 = arith.addf %5, %9 : vector<1x36xf32>
    %c0_13 = arith.constant 0 : index
    %c1 = arith.constant 1 : index
    %11 = memref.load %arg0[%c0_13, %c1] : memref<2x8xf32, #tpu.memory_space<smem>>
    %12 = vector.extract_strided_slice %4 {offsets = [1, 0], sizes = [1, 36], strides = [1, 1]} : vector<8x36xf32> to vector<1x36xf32>
    %13 = vector.broadcast %11 : f32 to vector<1x36xf32>
    %14 = arith.mulf %13, %12 : vector<1x36xf32>
    %15 = arith.addf %10, %14 : vector<1x36xf32>
    %c0_14 = arith.constant 0 : index
    %c2 = arith.constant 2 : index
    %16 = memref.load %arg0[%c0_14, %c2] : memref<2x8xf32, #tpu.memory_space<smem>>
    %17 = vector.extract_strided_slice %4 {offsets = [2, 0], sizes = [1, 36], strides = [1, 1]} : vector<8x36xf32> to vector<1x36xf32>
    %18 = vector.broadcast %16 : f32 to vector<1x36xf32>
    %19 = arith.mulf %18, %17 : vector<1x36xf32>
    %20 = arith.addf %15, %19 : vector<1x36xf32>
    %c0_15 = arith.constant 0 : index
    %c3 = arith.constant 3 : index
    %21 = memref.load %arg0[%c0_15, %c3] : memref<2x8xf32, #tpu.memory_space<smem>>
    %22 = vector.extract_strided_slice %4 {offsets = [3, 0], sizes = [1, 36], strides = [1, 1]} : vector<8x36xf32> to vector<1x36xf32>
    %23 = vector.broadcast %21 : f32 to vector<1x36xf32>
    %24 = arith.mulf %23, %22 : vector<1x36xf32>
    %25 = arith.addf %20, %24 : vector<1x36xf32>
    %c0_16 = arith.constant 0 : index
    %c4 = arith.constant 4 : index
    %26 = memref.load %arg0[%c0_16, %c4] : memref<2x8xf32, #tpu.memory_space<smem>>
    %27 = vector.extract_strided_slice %4 {offsets = [4, 0], sizes = [1, 36], strides = [1, 1]} : vector<8x36xf32> to vector<1x36xf32>
    %28 = vector.broadcast %26 : f32 to vector<1x36xf32>
    %29 = arith.mulf %28, %27 : vector<1x36xf32>
    %30 = arith.addf %25, %29 : vector<1x36xf32>
    %c0_17 = arith.constant 0 : index
    %c5 = arith.constant 5 : index
    %31 = memref.load %arg0[%c0_17, %c5] : memref<2x8xf32, #tpu.memory_space<smem>>
    %32 = vector.extract_strided_slice %4 {offsets = [5, 0], sizes = [1, 36], strides = [1, 1]} : vector<8x36xf32> to vector<1x36xf32>
    %33 = vector.broadcast %31 : f32 to vector<1x36xf32>
    %34 = arith.mulf %33, %32 : vector<1x36xf32>
    %35 = arith.addf %30, %34 : vector<1x36xf32>
    %c0_18 = arith.constant 0 : index
    %c6 = arith.constant 6 : index
    %36 = memref.load %arg0[%c0_18, %c6] : memref<2x8xf32, #tpu.memory_space<smem>>
    %37 = vector.extract_strided_slice %4 {offsets = [6, 0], sizes = [1, 36], strides = [1, 1]} : vector<8x36xf32> to vector<1x36xf32>
    %38 = vector.broadcast %36 : f32 to vector<1x36xf32>
    %39 = arith.mulf %38, %37 : vector<1x36xf32>
    %40 = arith.addf %35, %39 : vector<1x36xf32>
    %c0_19 = arith.constant 0 : index
    %c7 = arith.constant 7 : index
    %41 = memref.load %arg0[%c0_19, %c7] : memref<2x8xf32, #tpu.memory_space<smem>>
    %42 = vector.extract_strided_slice %4 {offsets = [7, 0], sizes = [1, 36], strides = [1, 1]} : vector<8x36xf32> to vector<1x36xf32>
    %43 = vector.broadcast %41 : f32 to vector<1x36xf32>
    %44 = arith.mulf %43, %42 : vector<1x36xf32>
    %45 = arith.addf %40, %44 : vector<1x36xf32>
    %46 = vector.broadcast %45 : vector<1x36xf32> to vector<8x36xf32>
    %47 = arith.mulf %2, %46 : vector<8x36xf32>
    %48 = arith.mulf %47, %47 : vector<8x36xf32>
    %cst = arith.constant dense<0.000000e+00> : vector<8xf32>
    %49 = vector.multi_reduction <add>, %48, %cst [1] : vector<8x36xf32> to vector<8xf32>
    %50 = vector.shape_cast %49 : vector<8xf32> to vector<8x1xf32>
    %cst_20 = arith.constant 9.99999993E-9 : f32
    %51 = vector.broadcast %cst_20 : f32 to vector<8x1xf32>
    %52 = arith.addf %50, %51 : vector<8x1xf32>
    %53 = math.rsqrt %52 : vector<8x1xf32>
    %54 = vector.broadcast %53 : vector<8x1xf32> to vector<8x36xf32>
    %55 = arith.mulf %47, %54 : vector<8x36xf32>
    %c1_21 = arith.constant 1 : index
    %c0_22 = arith.constant 0 : index
    %56 = memref.load %arg0[%c1_21, %c0_22] : memref<2x8xf32, #tpu.memory_space<smem>>
    %57 = vector.extract_strided_slice %4 {offsets = [0, 0], sizes = [1, 36], strides = [1, 1]} : vector<8x36xf32> to vector<1x36xf32>
    %58 = vector.broadcast %56 : f32 to vector<1x36xf32>
    %59 = arith.mulf %58, %57 : vector<1x36xf32>
    %60 = arith.addf %5, %59 : vector<1x36xf32>
    %c1_23 = arith.constant 1 : index
    %c1_24 = arith.constant 1 : index
    %61 = memref.load %arg0[%c1_23, %c1_24] : memref<2x8xf32, #tpu.memory_space<smem>>
    %62 = vector.extract_strided_slice %4 {offsets = [1, 0], sizes = [1, 36], strides = [1, 1]} : vector<8x36xf32> to vector<1x36xf32>
    %63 = vector.broadcast %61 : f32 to vector<1x36xf32>
    %64 = arith.mulf %63, %62 : vector<1x36xf32>
    %65 = arith.addf %60, %64 : vector<1x36xf32>
    %c1_25 = arith.constant 1 : index
    %c2_26 = arith.constant 2 : index
    %66 = memref.load %arg0[%c1_25, %c2_26] : memref<2x8xf32, #tpu.memory_space<smem>>
    %67 = vector.extract_strided_slice %4 {offsets = [2, 0], sizes = [1, 36], strides = [1, 1]} : vector<8x36xf32> to vector<1x36xf32>
    %68 = vector.broadcast %66 : f32 to vector<1x36xf32>
    %69 = arith.mulf %68, %67 : vector<1x36xf32>
    %70 = arith.addf %65, %69 : vector<1x36xf32>
    %c1_27 = arith.constant 1 : index
    %c3_28 = arith.constant 3 : index
    %71 = memref.load %arg0[%c1_27, %c3_28] : memref<2x8xf32, #tpu.memory_space<smem>>
    %72 = vector.extract_strided_slice %4 {offsets = [3, 0], sizes = [1, 36], strides = [1, 1]} : vector<8x36xf32> to vector<1x36xf32>
    %73 = vector.broadcast %71 : f32 to vector<1x36xf32>
    %74 = arith.mulf %73, %72 : vector<1x36xf32>
    %75 = arith.addf %70, %74 : vector<1x36xf32>
    %c1_29 = arith.constant 1 : index
    %c4_30 = arith.constant 4 : index
    %76 = memref.load %arg0[%c1_29, %c4_30] : memref<2x8xf32, #tpu.memory_space<smem>>
    %77 = vector.extract_strided_slice %4 {offsets = [4, 0], sizes = [1, 36], strides = [1, 1]} : vector<8x36xf32> to vector<1x36xf32>
    %78 = vector.broadcast %76 : f32 to vector<1x36xf32>
    %79 = arith.mulf %78, %77 : vector<1x36xf32>
    %80 = arith.addf %75, %79 : vector<1x36xf32>
    %c1_31 = arith.constant 1 : index
    %c5_32 = arith.constant 5 : index
    %81 = memref.load %arg0[%c1_31, %c5_32] : memref<2x8xf32, #tpu.memory_space<smem>>
    %82 = vector.extract_strided_slice %4 {offsets = [5, 0], sizes = [1, 36], strides = [1, 1]} : vector<8x36xf32> to vector<1x36xf32>
    %83 = vector.broadcast %81 : f32 to vector<1x36xf32>
    %84 = arith.mulf %83, %82 : vector<1x36xf32>
    %85 = arith.addf %80, %84 : vector<1x36xf32>
    %c1_33 = arith.constant 1 : index
    %c6_34 = arith.constant 6 : index
    %86 = memref.load %arg0[%c1_33, %c6_34] : memref<2x8xf32, #tpu.memory_space<smem>>
    %87 = vector.extract_strided_slice %4 {offsets = [6, 0], sizes = [1, 36], strides = [1, 1]} : vector<8x36xf32> to vector<1x36xf32>
    %88 = vector.broadcast %86 : f32 to vector<1x36xf32>
    %89 = arith.mulf %88, %87 : vector<1x36xf32>
    %90 = arith.addf %85, %89 : vector<1x36xf32>
    %c1_35 = arith.constant 1 : index
    %c7_36 = arith.constant 7 : index
    %91 = memref.load %arg0[%c1_35, %c7_36] : memref<2x8xf32, #tpu.memory_space<smem>>
    %92 = vector.extract_strided_slice %4 {offsets = [7, 0], sizes = [1, 36], strides = [1, 1]} : vector<8x36xf32> to vector<1x36xf32>
    %93 = vector.broadcast %91 : f32 to vector<1x36xf32>
    %94 = arith.mulf %93, %92 : vector<1x36xf32>
    %95 = arith.addf %90, %94 : vector<1x36xf32>
    %96 = vector.broadcast %95 : vector<1x36xf32> to vector<8x36xf32>
    %97 = arith.mulf %2, %96 : vector<8x36xf32>
    %98 = arith.mulf %97, %97 : vector<8x36xf32>
    %cst_37 = arith.constant dense<0.000000e+00> : vector<8xf32>
    %99 = vector.multi_reduction <add>, %98, %cst_37 [1] : vector<8x36xf32> to vector<8xf32>
    %100 = vector.shape_cast %99 : vector<8xf32> to vector<8x1xf32>
    %cst_38 = arith.constant 9.99999993E-9 : f32
    %101 = vector.broadcast %cst_38 : f32 to vector<8x1xf32>
    %102 = arith.addf %100, %101 : vector<8x1xf32>
    %103 = math.rsqrt %102 : vector<8x1xf32>
    %104 = vector.broadcast %103 : vector<8x1xf32> to vector<8x36xf32>
    %105 = arith.mulf %97, %104 : vector<8x36xf32>
    %c17_i32 = arith.constant 17 : i32
    %106 = tpu.dynamic_rotate %0 by %c17_i32 dim 1 : vector<8x256xf32>, i32 -> vector<8x256xf32>
    %c17_i32_39 = arith.constant 17 : i32
    %107 = tpu.dynamic_rotate %1 by %c17_i32_39 dim 1 : vector<8x256xf32>, i32 -> vector<8x256xf32>
    %c0_40 = arith.constant 0 : index
    %c0_41 = arith.constant 0 : index
    %108 = vector.load %arg5[%c0_40, %c0_41] : memref<9x256xf32, #tpu.memory_space<vmem>>, vector<1x256xf32>
    %109 = vector.broadcast %108 : vector<1x256xf32> to vector<8x256xf32>
    %110 = arith.mulf %106, %109 : vector<8x256xf32>
    %111 = vector.broadcast %108 : vector<1x256xf32> to vector<8x256xf32>
    %112 = arith.mulf %107, %111 : vector<8x256xf32>
    %113 = vector.extract_strided_slice %110 {offsets = [0, 0], sizes = [4, 256], strides = [1, 1]} : vector<8x256xf32> to vector<4x256xf32>
    %c0_42 = arith.constant 0 : index
    %c0_43 = arith.constant 0 : index
    %114 = vector.load %arg13[%c0_42, %c0_43] : memref<36x512xf32, #tpu.memory_space<vmem>>, vector<4x256xf32>
    tpu.vector_store %arg13[%c0_42, %c0_43], %113 {strides = array<i32>} : memref<36x512xf32, #tpu.memory_space<vmem>>, vector<4x256xf32>,
    %115 = vector.extract_strided_slice %112 {offsets = [0, 0], sizes = [4, 256], strides = [1, 1]} : vector<8x256xf32> to vector<4x256xf32>
    %c0_44 = arith.constant 0 : index
    %c0_45 = arith.constant 0 : index
    %116 = vector.load %arg14[%c0_44, %c0_45] : memref<36x512xf32, #tpu.memory_space<vmem>>, vector<4x256xf32>
    tpu.vector_store %arg14[%c0_44, %c0_45], %115 {strides = array<i32>} : memref<36x512xf32, #tpu.memory_space<vmem>>, vector<4x256xf32>,
    %117 = vector.extract_strided_slice %110 {offsets = [4, 0], sizes = [4, 256], strides = [1, 1]} : vector<8x256xf32> to vector<4x256xf32>
    %c0_46 = arith.constant 0 : index
    %c256 = arith.constant 256 : index
    %118 = vector.load %arg13[%c0_46, %c256] : memref<36x512xf32, #tpu.memory_space<vmem>>, vector<4x256xf32>
    tpu.vector_store %arg13[%c0_46, %c256], %117 {strides = array<i32>} : memref<36x512xf32, #tpu.memory_space<vmem>>, vector<4x256xf32>,
    %119 = vector.extract_strided_slice %112 {offsets = [4, 0], sizes = [4, 256], strides = [1, 1]} : vector<8x256xf32> to vector<4x256xf32>
    %c0_47 = arith.constant 0 : index
    %c256_48 = arith.constant 256 : index
    %120 = vector.load %arg14[%c0_47, %c256_48] : memref<36x512xf32, #tpu.memory_space<vmem>>, vector<4x256xf32>
    tpu.vector_store %arg14[%c0_47, %c256_48], %119 {strides = array<i32>} : memref<36x512xf32, #tpu.memory_space<vmem>>, vector<4x256xf32>,
    %c16_i32 = arith.constant 16 : i32
    %121 = tpu.dynamic_rotate %0 by %c16_i32 dim 1 : vector<8x256xf32>, i32 -> vector<8x256xf32>
    %c16_i32_49 = arith.constant 16 : i32
    %122 = tpu.dynamic_rotate %1 by %c16_i32_49 dim 1 : vector<8x256xf32>, i32 -> vector<8x256xf32>
    %c1_50 = arith.constant 1 : index
    %c0_51 = arith.constant 0 : index
    %123 = vector.load %arg5[%c1_50, %c0_51] : memref<9x256xf32, #tpu.memory_space<vmem>>, vector<1x256xf32>
    %124 = vector.broadcast %123 : vector<1x256xf32> to vector<8x256xf32>
    %125 = arith.mulf %121, %124 : vector<8x256xf32>
    %126 = vector.broadcast %123 : vector<1x256xf32> to vector<8x256xf32>
    %127 = arith.mulf %122, %126 : vector<8x256xf32>
    %128 = vector.extract_strided_slice %125 {offsets = [0, 0], sizes = [4, 256], strides = [1, 1]} : vector<8x256xf32> to vector<4x256xf32>
    %c4_52 = arith.constant 4 : index
    %c0_53 = arith.constant 0 : index
    %129 = vector.load %arg13[%c4_52, %c0_53] : memref<36x512xf32, #tpu.memory_space<vmem>>, vector<4x256xf32>
    tpu.vector_store %arg13[%c4_52, %c0_53], %128 {strides = array<i32>} : memref<36x512xf32, #tpu.memory_space<vmem>>, vector<4x256xf32>,
    %130 = vector.extract_strided_slice %127 {offsets = [0, 0], sizes = [4, 256], strides = [1, 1]} : vector<8x256xf32> to vector<4x256xf32>
    %c4_54 = arith.constant 4 : index
    %c0_55 = arith.constant 0 : index
    %131 = vector.load %arg14[%c4_54, %c0_55] : memref<36x512xf32, #tpu.memory_space<vmem>>, vector<4x256xf32>
    tpu.vector_store %arg14[%c4_54, %c0_55], %130 {strides = array<i32>} : memref<36x512xf32, #tpu.memory_space<vmem>>, vector<4x256xf32>,
    %132 = vector.extract_strided_slice %125 {offsets = [4, 0], sizes = [4, 256], strides = [1, 1]} : vector<8x256xf32> to vector<4x256xf32>
    %c4_56 = arith.constant 4 : index
    %c256_57 = arith.constant 256 : index
    %133 = vector.load %arg13[%c4_56, %c256_57] : memref<36x512xf32, #tpu.memory_space<vmem>>, vector<4x256xf32>
    tpu.vector_store %arg13[%c4_56, %c256_57], %132 {strides = array<i32>} : memref<36x512xf32, #tpu.memory_space<vmem>>, vector<4x256xf32>,
    %134 = vector.extract_strided_slice %127 {offsets = [4, 0], sizes = [4, 256], strides = [1, 1]} : vector<8x256xf32> to vector<4x256xf32>
    %c4_58 = arith.constant 4 : index
    %c256_59 = arith.constant 256 : index
    %135 = vector.load %arg14[%c4_58, %c256_59] : memref<36x512xf32, #tpu.memory_space<vmem>>, vector<4x256xf32>
    tpu.vector_store %arg14[%c4_58, %c256_59], %134 {strides = array<i32>} : memref<36x512xf32, #tpu.memory_space<vmem>>, vector<4x256xf32>,
    %c15_i32 = arith.constant 15 : i32
    %136 = tpu.dynamic_rotate %0 by %c15_i32 dim 1 : vector<8x256xf32>, i32 -> vector<8x256xf32>
    %c15_i32_60 = arith.constant 15 : i32
    %137 = tpu.dynamic_rotate %1 by %c15_i32_60 dim 1 : vector<8x256xf32>, i32 -> vector<8x256xf32>
    %c2_61 = arith.constant 2 : index
    %c0_62 = arith.constant 0 : index
    %138 = vector.load %arg5[%c2_61, %c0_62] : memref<9x256xf32, #tpu.memory_space<vmem>>, vector<1x256xf32>
    %139 = vector.broadcast %138 : vector<1x256xf32> to vector<8x256xf32>
    %140 = arith.mulf %136, %139 : vector<8x256xf32>
    %141 = vector.broadcast %138 : vector<1x256xf32> to vector<8x256xf32>
    %142 = arith.mulf %137, %141 : vector<8x256xf32>
    %143 = vector.extract_strided_slice %140 {offsets = [0, 0], sizes = [4, 256], strides = [1, 1]} : vector<8x256xf32> to vector<4x256xf32>
    %c8 = arith.constant 8 : index
    %c0_63 = arith.constant 0 : index
    %144 = vector.load %arg13[%c8, %c0_63] : memref<36x512xf32, #tpu.memory_space<vmem>>, vector<4x256xf32>
    tpu.vector_store %arg13[%c8, %c0_63], %143 {strides = array<i32>} : memref<36x512xf32, #tpu.memory_space<vmem>>, vector<4x256xf32>,
    %145 = vector.extract_strided_slice %142 {offsets = [0, 0], sizes = [4, 256], strides = [1, 1]} : vector<8x256xf32> to vector<4x256xf32>
    %c8_64 = arith.constant 8 : index
    %c0_65 = arith.constant 0 : index
    %146 = vector.load %arg14[%c8_64, %c0_65] : memref<36x512xf32, #tpu.memory_space<vmem>>, vector<4x256xf32>
    tpu.vector_store %arg14[%c8_64, %c0_65], %145 {strides = array<i32>} : memref<36x512xf32, #tpu.memory_space<vmem>>, vector<4x256xf32>,
    %147 = vector.extract_strided_slice %140 {offsets = [4, 0], sizes = [4, 256], strides = [1, 1]} : vector<8x256xf32> to vector<4x256xf32>
    %c8_66 = arith.constant 8 : index
    %c256_67 = arith.constant 256 : index
    %148 = vector.load %arg13[%c8_66, %c256_67] : memref<36x512xf32, #tpu.memory_space<vmem>>, vector<4x256xf32>
    tpu.vector_store %arg13[%c8_66, %c256_67], %147 {strides = array<i32>} : memref<36x512xf32, #tpu.memory_space<vmem>>, vector<4x256xf32>,
    %149 = vector.extract_strided_slice %142 {offsets = [4, 0], sizes = [4, 256], strides = [1, 1]} : vector<8x256xf32> to vector<4x256xf32>
    %c8_68 = arith.constant 8 : index
    %c256_69 = arith.constant 256 : index
    %150 = vector.load %arg14[%c8_68, %c256_69] : memref<36x512xf32, #tpu.memory_space<vmem>>, vector<4x256xf32>
    tpu.vector_store %arg14[%c8_68, %c256_69], %149 {strides = array<i32>} : memref<36x512xf32, #tpu.memory_space<vmem>>, vector<4x256xf32>,
    %c1_i32 = arith.constant 1 : i32
    %151 = tpu.dynamic_rotate %0 by %c1_i32 dim 1 : vector<8x256xf32>, i32 -> vector<8x256xf32>
    %c1_i32_70 = arith.constant 1 : i32
    %152 = tpu.dynamic_rotate %1 by %c1_i32_70 dim 1 : vector<8x256xf32>, i32 -> vector<8x256xf32>
    %c3_71 = arith.constant 3 : index
    %c0_72 = arith.constant 0 : index
    %153 = vector.load %arg5[%c3_71, %c0_72] : memref<9x256xf32, #tpu.memory_space<vmem>>, vector<1x256xf32>
    %154 = vector.broadcast %153 : vector<1x256xf32> to vector<8x256xf32>
    %155 = arith.mulf %151, %154 : vector<8x256xf32>
    %156 = vector.broadcast %153 : vector<1x256xf32> to vector<8x256xf32>
    %157 = arith.mulf %152, %156 : vector<8x256xf32>
    %158 = vector.extract_strided_slice %155 {offsets = [0, 0], sizes = [4, 256], strides = [1, 1]} : vector<8x256xf32> to vector<4x256xf32>
    %c12 = arith.constant 12 : index
    %c0_73 = arith.constant 0 : index
    %159 = vector.load %arg13[%c12, %c0_73] : memref<36x512xf32, #tpu.memory_space<vmem>>, vector<4x256xf32>
    tpu.vector_store %arg13[%c12, %c0_73], %158 {strides = array<i32>} : memref<36x512xf32, #tpu.memory_space<vmem>>, vector<4x256xf32>,
    %160 = vector.extract_strided_slice %157 {offsets = [0, 0], sizes = [4, 256], strides = [1, 1]} : vector<8x256xf32> to vector<4x256xf32>
    %c12_74 = arith.constant 12 : index
    %c0_75 = arith.constant 0 : index
    %161 = vector.load %arg14[%c12_74, %c0_75] : memref<36x512xf32, #tpu.memory_space<vmem>>, vector<4x256xf32>
    tpu.vector_store %arg14[%c12_74, %c0_75], %160 {strides = array<i32>} : memref<36x512xf32, #tpu.memory_space<vmem>>, vector<4x256xf32>,
    %162 = vector.extract_strided_slice %155 {offsets = [4, 0], sizes = [4, 256], strides = [1, 1]} : vector<8x256xf32> to vector<4x256xf32>
    %c12_76 = arith.constant 12 : index
    %c256_77 = arith.constant 256 : index
    %163 = vector.load %arg13[%c12_76, %c256_77] : memref<36x512xf32, #tpu.memory_space<vmem>>, vector<4x256xf32>
    tpu.vector_store %arg13[%c12_76, %c256_77], %162 {strides = array<i32>} : memref<36x512xf32, #tpu.memory_space<vmem>>, vector<4x256xf32>,
    %164 = vector.extract_strided_slice %157 {offsets = [4, 0], sizes = [4, 256], strides = [1, 1]} : vector<8x256xf32> to vector<4x256xf32>
    %c12_78 = arith.constant 12 : index
    %c256_79 = arith.constant 256 : index
    %165 = vector.load %arg14[%c12_78, %c256_79] : memref<36x512xf32, #tpu.memory_space<vmem>>, vector<4x256xf32>
    tpu.vector_store %arg14[%c12_78, %c256_79], %164 {strides = array<i32>} : memref<36x512xf32, #tpu.memory_space<vmem>>, vector<4x256xf32>,
    %166 = vector.extract_strided_slice %0 {offsets = [0, 0], sizes = [4, 256], strides = [1, 1]} : vector<8x256xf32> to vector<4x256xf32>
    %c16 = arith.constant 16 : index
    %c0_80 = arith.constant 0 : index
    %167 = vector.load %arg13[%c16, %c0_80] : memref<36x512xf32, #tpu.memory_space<vmem>>, vector<4x256xf32>
    tpu.vector_store %arg13[%c16, %c0_80], %166 {strides = array<i32>} : memref<36x512xf32, #tpu.memory_space<vmem>>, vector<4x256xf32>,
    %168 = vector.extract_strided_slice %1 {offsets = [0, 0], sizes = [4, 256], strides = [1, 1]} : vector<8x256xf32> to vector<4x256xf32>
    %c16_81 = arith.constant 16 : index
    %c0_82 = arith.constant 0 : index
    %169 = vector.load %arg14[%c16_81, %c0_82] : memref<36x512xf32, #tpu.memory_space<vmem>>, vector<4x256xf32>
    tpu.vector_store %arg14[%c16_81, %c0_82], %168 {strides = array<i32>} : memref<36x512xf32, #tpu.memory_space<vmem>>, vector<4x256xf32>,
    %170 = vector.extract_strided_slice %0 {offsets = [4, 0], sizes = [4, 256], strides = [1, 1]} : vector<8x256xf32> to vector<4x256xf32>
    %c16_83 = arith.constant 16 : index
    %c256_84 = arith.constant 256 : index
    %171 = vector.load %arg13[%c16_83, %c256_84] : memref<36x512xf32, #tpu.memory_space<vmem>>, vector<4x256xf32>
    tpu.vector_store %arg13[%c16_83, %c256_84], %170 {strides = array<i32>} : memref<36x512xf32, #tpu.memory_space<vmem>>, vector<4x256xf32>,
    %172 = vector.extract_strided_slice %1 {offsets = [4, 0], sizes = [4, 256], strides = [1, 1]} : vector<8x256xf32> to vector<4x256xf32>
    %c16_85 = arith.constant 16 : index
    %c256_86 = arith.constant 256 : index
    %173 = vector.load %arg14[%c16_85, %c256_86] : memref<36x512xf32, #tpu.memory_space<vmem>>, vector<4x256xf32>
    tpu.vector_store %arg14[%c16_85, %c256_86], %172 {strides = array<i32>} : memref<36x512xf32, #tpu.memory_space<vmem>>, vector<4x256xf32>,
    %c255_i32 = arith.constant 255 : i32
    %174 = tpu.dynamic_rotate %0 by %c255_i32 dim 1 : vector<8x256xf32>, i32 -> vector<8x256xf32>
    %c255_i32_87 = arith.constant 255 : i32
    %175 = tpu.dynamic_rotate %1 by %c255_i32_87 dim 1 : vector<8x256xf32>, i32 -> vector<8x256xf32>
    %c5_88 = arith.constant 5 : index
    %c0_89 = arith.constant 0 : index
    %176 = vector.load %arg5[%c5_88, %c0_89] : memref<9x256xf32, #tpu.memory_space<vmem>>, vector<1x256xf32>
    %177 = vector.broadcast %176 : vector<1x256xf32> to vector<8x256xf32>
    %178 = arith.mulf %174, %177 : vector<8x256xf32>
    %179 = vector.broadcast %176 : vector<1x256xf32> to vector<8x256xf32>
    %180 = arith.mulf %175, %179 : vector<8x256xf32>
    %181 = vector.extract_strided_slice %178 {offsets = [0, 0], sizes = [4, 256], strides = [1, 1]} : vector<8x256xf32> to vector<4x256xf32>
    %c20 = arith.constant 20 : index
    %c0_90 = arith.constant 0 : index
    %182 = vector.load %arg13[%c20, %c0_90] : memref<36x512xf32, #tpu.memory_space<vmem>>, vector<4x256xf32>
    tpu.vector_store %arg13[%c20, %c0_90], %181 {strides = array<i32>} : memref<36x512xf32, #tpu.memory_space<vmem>>, vector<4x256xf32>,
    %183 = vector.extract_strided_slice %180 {offsets = [0, 0], sizes = [4, 256], strides = [1, 1]} : vector<8x256xf32> to vector<4x256xf32>
    %c20_91 = arith.constant 20 : index
    %c0_92 = arith.constant 0 : index
    %184 = vector.load %arg14[%c20_91, %c0_92] : memref<36x512xf32, #tpu.memory_space<vmem>>, vector<4x256xf32>
    tpu.vector_store %arg14[%c20_91, %c0_92], %183 {strides = array<i32>} : memref<36x512xf32, #tpu.memory_space<vmem>>, vector<4x256xf32>,
    %185 = vector.extract_strided_slice %178 {offsets = [4, 0], sizes = [4, 256], strides = [1, 1]} : vector<8x256xf32> to vector<4x256xf32>
    %c20_93 = arith.constant 20 : index
    %c256_94 = arith.constant 256 : index
    %186 = vector.load %arg13[%c20_93, %c256_94] : memref<36x512xf32, #tpu.memory_space<vmem>>, vector<4x256xf32>
    tpu.vector_store %arg13[%c20_93, %c256_94], %185 {strides = array<i32>} : memref<36x512xf32, #tpu.memory_space<vmem>>, vector<4x256xf32>,
    %187 = vector.extract_strided_slice %180 {offsets = [4, 0], sizes = [4, 256], strides = [1, 1]} : vector<8x256xf32> to vector<4x256xf32>
    %c20_95 = arith.constant 20 : index
    %c256_96 = arith.constant 256 : index
    %188 = vector.load %arg14[%c20_95, %c256_96] : memref<36x512xf32, #tpu.memory_space<vmem>>, vector<4x256xf32>
    tpu.vector_store %arg14[%c20_95, %c256_96], %187 {strides = array<i32>} : memref<36x512xf32, #tpu.memory_space<vmem>>, vector<4x256xf32>,
    %c241_i32 = arith.constant 241 : i32
    %189 = tpu.dynamic_rotate %0 by %c241_i32 dim 1 : vector<8x256xf32>, i32 -> vector<8x256xf32>
    %c241_i32_97 = arith.constant 241 : i32
    %190 = tpu.dynamic_rotate %1 by %c241_i32_97 dim 1 : vector<8x256xf32>, i32 -> vector<8x256xf32>
    %c6_98 = arith.constant 6 : index
    %c0_99 = arith.constant 0 : index
    %191 = vector.load %arg5[%c6_98, %c0_99] : memref<9x256xf32, #tpu.memory_space<vmem>>, vector<1x256xf32>
    %192 = vector.broadcast %191 : vector<1x256xf32> to vector<8x256xf32>
    %193 = arith.mulf %189, %192 : vector<8x256xf32>
    %194 = vector.broadcast %191 : vector<1x256xf32> to vector<8x256xf32>
    %195 = arith.mulf %190, %194 : vector<8x256xf32>
    %196 = vector.extract_strided_slice %193 {offsets = [0, 0], sizes = [4, 256], strides = [1, 1]} : vector<8x256xf32> to vector<4x256xf32>
    %c24 = arith.constant 24 : index
    %c0_100 = arith.constant 0 : index
    %197 = vector.load %arg13[%c24, %c0_100] : memref<36x512xf32, #tpu.memory_space<vmem>>, vector<4x256xf32>
    tpu.vector_store %arg13[%c24, %c0_100], %196 {strides = array<i32>} : memref<36x512xf32, #tpu.memory_space<vmem>>, vector<4x256xf32>,
    %198 = vector.extract_strided_slice %195 {offsets = [0, 0], sizes = [4, 256], strides = [1, 1]} : vector<8x256xf32> to vector<4x256xf32>
    %c24_101 = arith.constant 24 : index
    %c0_102 = arith.constant 0 : index
    %199 = vector.load %arg14[%c24_101, %c0_102] : memref<36x512xf32, #tpu.memory_space<vmem>>, vector<4x256xf32>
    tpu.vector_store %arg14[%c24_101, %c0_102], %198 {strides = array<i32>} : memref<36x512xf32, #tpu.memory_space<vmem>>, vector<4x256xf32>,
    %200 = vector.extract_strided_slice %193 {offsets = [4, 0], sizes = [4, 256], strides = [1, 1]} : vector<8x256xf32> to vector<4x256xf32>
    %c24_103 = arith.constant 24 : index
    %c256_104 = arith.constant 256 : index
    %201 = vector.load %arg13[%c24_103, %c256_104] : memref<36x512xf32, #tpu.memory_space<vmem>>, vector<4x256xf32>
    tpu.vector_store %arg13[%c24_103, %c256_104], %200 {strides = array<i32>} : memref<36x512xf32, #tpu.memory_space<vmem>>, vector<4x256xf32>,
    %202 = vector.extract_strided_slice %195 {offsets = [4, 0], sizes = [4, 256], strides = [1, 1]} : vector<8x256xf32> to vector<4x256xf32>
    %c24_105 = arith.constant 24 : index
    %c256_106 = arith.constant 256 : index
    %203 = vector.load %arg14[%c24_105, %c256_106] : memref<36x512xf32, #tpu.memory_space<vmem>>, vector<4x256xf32>
    tpu.vector_store %arg14[%c24_105, %c256_106], %202 {strides = array<i32>} : memref<36x512xf32, #tpu.memory_space<vmem>>, vector<4x256xf32>,
    %c240_i32 = arith.constant 240 : i32
    %204 = tpu.dynamic_rotate %0 by %c240_i32 dim 1 : vector<8x256xf32>, i32 -> vector<8x256xf32>
    %c240_i32_107 = arith.constant 240 : i32
    %205 = tpu.dynamic_rotate %1 by %c240_i32_107 dim 1 : vector<8x256xf32>, i32 -> vector<8x256xf32>
    %c7_108 = arith.constant 7 : index
    %c0_109 = arith.constant 0 : index
    %206 = vector.load %arg5[%c7_108, %c0_109] : memref<9x256xf32, #tpu.memory_space<vmem>>, vector<1x256xf32>
    %207 = vector.broadcast %206 : vector<1x256xf32> to vector<8x256xf32>
    %208 = arith.mulf %204, %207 : vector<8x256xf32>
    %209 = vector.broadcast %206 : vector<1x256xf32> to vector<8x256xf32>
    %210 = arith.mulf %205, %209 : vector<8x256xf32>
    %211 = vector.extract_strided_slice %208 {offsets = [0, 0], sizes = [4, 256], strides = [1, 1]} : vector<8x256xf32> to vector<4x256xf32>
    %c28 = arith.constant 28 : index
    %c0_110 = arith.constant 0 : index
    %212 = vector.load %arg13[%c28, %c0_110] : memref<36x512xf32, #tpu.memory_space<vmem>>, vector<4x256xf32>
    tpu.vector_store %arg13[%c28, %c0_110], %211 {strides = array<i32>} : memref<36x512xf32, #tpu.memory_space<vmem>>, vector<4x256xf32>,
    %213 = vector.extract_strided_slice %210 {offsets = [0, 0], sizes = [4, 256], strides = [1, 1]} : vector<8x256xf32> to vector<4x256xf32>
    %c28_111 = arith.constant 28 : index
    %c0_112 = arith.constant 0 : index
    %214 = vector.load %arg14[%c28_111, %c0_112] : memref<36x512xf32, #tpu.memory_space<vmem>>, vector<4x256xf32>
    tpu.vector_store %arg14[%c28_111, %c0_112], %213 {strides = array<i32>} : memref<36x512xf32, #tpu.memory_space<vmem>>, vector<4x256xf32>,
    %215 = vector.extract_strided_slice %208 {offsets = [4, 0], sizes = [4, 256], strides = [1, 1]} : vector<8x256xf32> to vector<4x256xf32>
    %c28_113 = arith.constant 28 : index
    %c256_114 = arith.constant 256 : index
    %216 = vector.load %arg13[%c28_113, %c256_114] : memref<36x512xf32, #tpu.memory_space<vmem>>, vector<4x256xf32>
    tpu.vector_store %arg13[%c28_113, %c256_114], %215 {strides = array<i32>} : memref<36x512xf32, #tpu.memory_space<vmem>>, vector<4x256xf32>,
    %217 = vector.extract_strided_slice %210 {offsets = [4, 0], sizes = [4, 256], strides = [1, 1]} : vector<8x256xf32> to vector<4x256xf32>
    %c28_115 = arith.constant 28 : index
    %c256_116 = arith.constant 256 : index
    %218 = vector.load %arg14[%c28_115, %c256_116] : memref<36x512xf32, #tpu.memory_space<vmem>>, vector<4x256xf32>
    tpu.vector_store %arg14[%c28_115, %c256_116], %217 {strides = array<i32>} : memref<36x512xf32, #tpu.memory_space<vmem>>, vector<4x256xf32>,
    %c239_i32 = arith.constant 239 : i32
    %219 = tpu.dynamic_rotate %0 by %c239_i32 dim 1 : vector<8x256xf32>, i32 -> vector<8x256xf32>
    %c239_i32_117 = arith.constant 239 : i32
    %220 = tpu.dynamic_rotate %1 by %c239_i32_117 dim 1 : vector<8x256xf32>, i32 -> vector<8x256xf32>
    %c8_118 = arith.constant 8 : index
    %c0_119 = arith.constant 0 : index
    %221 = vector.load %arg5[%c8_118, %c0_119] : memref<9x256xf32, #tpu.memory_space<vmem>>, vector<1x256xf32>
    %222 = vector.broadcast %221 : vector<1x256xf32> to vector<8x256xf32>
    %223 = arith.mulf %219, %222 : vector<8x256xf32>
    %224 = vector.broadcast %221 : vector<1x256xf32> to vector<8x256xf32>
    %225 = arith.mulf %220, %224 : vector<8x256xf32>
    %226 = vector.extract_strided_slice %223 {offsets = [0, 0], sizes = [4, 256], strides = [1, 1]} : vector<8x256xf32> to vector<4x256xf32>
    %c32 = arith.constant 32 : index
    %c0_120 = arith.constant 0 : index
    %227 = vector.load %arg13[%c32, %c0_120] : memref<36x512xf32, #tpu.memory_space<vmem>>, vector<4x256xf32>
    tpu.vector_store %arg13[%c32, %c0_120], %226 {strides = array<i32>} : memref<36x512xf32, #tpu.memory_space<vmem>>, vector<4x256xf32>,
    %228 = vector.extract_strided_slice %225 {offsets = [0, 0], sizes = [4, 256], strides = [1, 1]} : vector<8x256xf32> to vector<4x256xf32>
    %c32_121 = arith.constant 32 : index
    %c0_122 = arith.constant 0 : index
    %229 = vector.load %arg14[%c32_121, %c0_122] : memref<36x512xf32, #tpu.memory_space<vmem>>, vector<4x256xf32>
    tpu.vector_store %arg14[%c32_121, %c0_122], %228 {strides = array<i32>} : memref<36x512xf32, #tpu.memory_space<vmem>>, vector<4x256xf32>,
    %230 = vector.extract_strided_slice %223 {offsets = [4, 0], sizes = [4, 256], strides = [1, 1]} : vector<8x256xf32> to vector<4x256xf32>
    %c32_123 = arith.constant 32 : index
    %c256_124 = arith.constant 256 : index
    %231 = vector.load %arg13[%c32_123, %c256_124] : memref<36x512xf32, #tpu.memory_space<vmem>>, vector<4x256xf32>
    tpu.vector_store %arg13[%c32_123, %c256_124], %230 {strides = array<i32>} : memref<36x512xf32, #tpu.memory_space<vmem>>, vector<4x256xf32>,
    %232 = vector.extract_strided_slice %225 {offsets = [4, 0], sizes = [4, 256], strides = [1, 1]} : vector<8x256xf32> to vector<4x256xf32>
    %c32_125 = arith.constant 32 : index
    %c256_126 = arith.constant 256 : index
    %233 = vector.load %arg14[%c32_125, %c256_126] : memref<36x512xf32, #tpu.memory_space<vmem>>, vector<4x256xf32>
    tpu.vector_store %arg14[%c32_125, %c256_126], %232 {strides = array<i32>} : memref<36x512xf32, #tpu.memory_space<vmem>>, vector<4x256xf32>,
    %c0_127 = arith.constant 0 : index
    %c0_128 = arith.constant 0 : index
    %234 = vector.load %arg8[%c0_127, %c0_128] : memref<8x1xf32, #tpu.memory_space<vmem>>, vector<8x1xf32>
    %c0_129 = arith.constant 0 : index
    %c0_130 = arith.constant 0 : index
    %235 = vector.load %arg13[%c0_129, %c0_130] : memref<36x512xf32, #tpu.memory_space<vmem>>, vector<36x256xf32>
    %c0_131 = arith.constant 0 : index
    %c0_132 = arith.constant 0 : index
    %236 = vector.load %arg14[%c0_131, %c0_132] : memref<36x512xf32, #tpu.memory_space<vmem>>, vector<36x256xf32>
    %cst_133 = arith.constant dense<0.000000e+00> : vector<8x256xf32>
    %237 = tpu.matmul %55, %235, %cst_133 {dimension_numbers = #tpu.dot_dimension_numbers<[1], [0], [0], [1], [0, 0, 1, 1], [], []>, precision = #tpu.contract_precision<fp32>} : vector<8x36xf32>, vector<36x256xf32>, vector<8x256xf32> -> vector<8x256xf32>
    %cst_134 = arith.constant dense<0.000000e+00> : vector<8x256xf32>
    %238 = tpu.matmul %3, %236, %cst_134 {dimension_numbers = #tpu.dot_dimension_numbers<[1], [0], [0], [1], [0, 0, 1, 1], [], []>, precision = #tpu.contract_precision<fp32>} : vector<8x36xf32>, vector<36x256xf32>, vector<8x256xf32> -> vector<8x256xf32>
    %239 = vector.broadcast %234 : vector<8x1xf32> to vector<8x256xf32>
    %240 = arith.addf %238, %239 : vector<8x256xf32>
    %c0_135 = arith.constant 0 : index
    %c256_136 = arith.constant 256 : index
    %241 = vector.load %arg13[%c0_135, %c256_136] : memref<36x512xf32, #tpu.memory_space<vmem>>, vector<36x256xf32>
    %c0_137 = arith.constant 0 : index
    %c256_138 = arith.constant 256 : index
    %242 = vector.load %arg14[%c0_137, %c256_138] : memref<36x512xf32, #tpu.memory_space<vmem>>, vector<36x256xf32>
    %cst_139 = arith.constant dense<0.000000e+00> : vector<8x256xf32>
    %243 = tpu.matmul %105, %241, %cst_139 {dimension_numbers = #tpu.dot_dimension_numbers<[1], [0], [0], [1], [0, 0, 1, 1], [], []>, precision = #tpu.contract_precision<fp32>} : vector<8x36xf32>, vector<36x256xf32>, vector<8x256xf32> -> vector<8x256xf32>
    %cst_140 = arith.constant dense<0.000000e+00> : vector<8x256xf32>
    %244 = tpu.matmul %3, %242, %cst_140 {dimension_numbers = #tpu.dot_dimension_numbers<[1], [0], [0], [1], [0, 0, 1, 1], [], []>, precision = #tpu.contract_precision<fp32>} : vector<8x36xf32>, vector<36x256xf32>, vector<8x256xf32> -> vector<8x256xf32>
    %245 = vector.broadcast %234 : vector<8x1xf32> to vector<8x256xf32>
    %246 = arith.addf %244, %245 : vector<8x256xf32>
    %cst_141 = arith.constant dense<0.000000e+00> : vector<8xf32>
    %247 = vector.multi_reduction <add>, %240, %cst_141 [1] : vector<8x256xf32> to vector<8xf32>
    %248 = vector.shape_cast %247 : vector<8xf32> to vector<8x1xf32>
    %cst_142 = arith.constant 0.000000e+00 : f32
    %249 = vector.broadcast %cst_142 : f32 to vector<8x1xf32>
    %250 = arith.addf %249, %248 : vector<8x1xf32>
    %cst_143 = arith.constant dense<0.000000e+00> : vector<8xf32>
    %251 = vector.multi_reduction <add>, %246, %cst_143 [1] : vector<8x256xf32> to vector<8xf32>
    %252 = vector.shape_cast %251 : vector<8xf32> to vector<8x1xf32>
    %253 = arith.addf %250, %252 : vector<8x1xf32>
    %cst_144 = arith.constant 0.001953125 : f32
    %254 = vector.broadcast %cst_144 : f32 to vector<8x1xf32>
    %255 = arith.mulf %253, %254 : vector<8x1xf32>
    %256 = vector.broadcast %255 : vector<8x1xf32> to vector<8x256xf32>
    %257 = arith.subf %240, %256 : vector<8x256xf32>
    %258 = vector.broadcast %255 : vector<8x1xf32> to vector<8x256xf32>
    %259 = arith.subf %246, %258 : vector<8x256xf32>
    %260 = arith.mulf %257, %257 : vector<8x256xf32>
    %cst_145 = arith.constant dense<0.000000e+00> : vector<8xf32>
    %261 = vector.multi_reduction <add>, %260, %cst_145 [1] : vector<8x256xf32> to vector<8xf32>
    %262 = vector.shape_cast %261 : vector<8xf32> to vector<8x1xf32>
    %cst_146 = arith.constant 0.000000e+00 : f32
    %263 = vector.broadcast %cst_146 : f32 to vector<8x1xf32>
    %264 = arith.addf %263, %262 : vector<8x1xf32>
    %265 = arith.mulf %259, %259 : vector<8x256xf32>
    %cst_147 = arith.constant dense<0.000000e+00> : vector<8xf32>
    %266 = vector.multi_reduction <add>, %265, %cst_147 [1] : vector<8x256xf32> to vector<8xf32>
    %267 = vector.shape_cast %266 : vector<8xf32> to vector<8x1xf32>
    %268 = arith.addf %264, %267 : vector<8x1xf32>
    %cst_148 = arith.constant 0.001953125 : f32
    %269 = vector.broadcast %cst_148 : f32 to vector<8x1xf32>
    %270 = arith.mulf %268, %269 : vector<8x1xf32>
    %cst_149 = arith.constant 9.99999974E-6 : f32
    %271 = vector.broadcast %cst_149 : f32 to vector<8x1xf32>
    %272 = arith.addf %270, %271 : vector<8x1xf32>
    %273 = math.rsqrt %272 : vector<8x1xf32>
    %c0_150 = arith.constant 0 : index
    %c0_151 = arith.constant 0 : index
    %274 = vector.load %arg9[%c0_150, %c0_151] : memref<8x1xf32, #tpu.memory_space<vmem>>, vector<8x1xf32>
    %275 = arith.mulf %273, %274 : vector<8x1xf32>
    %c0_152 = arith.constant 0 : index
    %c0_153 = arith.constant 0 : index
    %276 = vector.load %arg10[%c0_152, %c0_153] : memref<8x1xf32, #tpu.memory_space<vmem>>, vector<8x1xf32>
    %c0_154 = arith.constant 0 : index
    %c0_155 = arith.constant 0 : index
    %277 = vector.load %arg11[%c0_154, %c0_155] : memref<8x1xf32, #tpu.memory_space<vmem>>, vector<8x1xf32>
    %278 = vector.broadcast %275 : vector<8x1xf32> to vector<8x256xf32>
    %279 = arith.mulf %257, %278 : vector<8x256xf32>
    %280 = vector.broadcast %276 : vector<8x1xf32> to vector<8x256xf32>
    %281 = arith.addf %279, %280 : vector<8x256xf32>
    %cst_156 = arith.constant 2.000000e-01 : f32
    %282 = vector.broadcast %cst_156 : f32 to vector<8x256xf32>
    %283 = arith.mulf %282, %281 : vector<8x256xf32>
    %284 = arith.maximumf %281, %283 : vector<8x256xf32>
    %285 = vector.broadcast %277 : vector<8x1xf32> to vector<8x256xf32>
    %286 = arith.mulf %285, %237 : vector<8x256xf32>
    %cst_157 = arith.constant 1.000000e+00 : f32
    %287 = vector.broadcast %cst_157 : f32 to vector<8x1xf32>
    %288 = arith.subf %287, %277 : vector<8x1xf32>
    %289 = vector.broadcast %288 : vector<8x1xf32> to vector<8x256xf32>
    %290 = arith.mulf %289, %284 : vector<8x256xf32>
    %291 = arith.addf %286, %290 : vector<8x256xf32>
    %cst_158 = arith.constant 2.000000e-01 : f32
    %292 = vector.broadcast %cst_158 : f32 to vector<8x256xf32>
    %293 = arith.mulf %292, %291 : vector<8x256xf32>
    %294 = arith.maximumf %291, %293 : vector<8x256xf32>
    %c0_159 = arith.constant 0 : index
    %c0_160 = arith.constant 0 : index
    %295 = vector.load %arg12[%c0_159, %c0_160] : memref<16x256xf32, #tpu.memory_space<vmem>>, vector<8x256xf32>
    tpu.vector_store %arg12[%c0_159, %c0_160], %294 {strides = array<i32>} : memref<16x256xf32, #tpu.memory_space<vmem>>, vector<8x256xf32>,
    %296 = vector.broadcast %275 : vector<8x1xf32> to vector<8x256xf32>
    %297 = arith.mulf %259, %296 : vector<8x256xf32>
    %298 = vector.broadcast %276 : vector<8x1xf32> to vector<8x256xf32>
    %299 = arith.addf %297, %298 : vector<8x256xf32>
    %cst_161 = arith.constant 2.000000e-01 : f32
    %300 = vector.broadcast %cst_161 : f32 to vector<8x256xf32>
    %301 = arith.mulf %300, %299 : vector<8x256xf32>
    %302 = arith.maximumf %299, %301 : vector<8x256xf32>
    %303 = vector.broadcast %277 : vector<8x1xf32> to vector<8x256xf32>
    %304 = arith.mulf %303, %243 : vector<8x256xf32>
    %cst_162 = arith.constant 1.000000e+00 : f32
    %305 = vector.broadcast %cst_162 : f32 to vector<8x1xf32>
    %306 = arith.subf %305, %277 : vector<8x1xf32>
    %307 = vector.broadcast %306 : vector<8x1xf32> to vector<8x256xf32>
    %308 = arith.mulf %307, %302 : vector<8x256xf32>
    %309 = arith.addf %304, %308 : vector<8x256xf32>
    %cst_163 = arith.constant 2.000000e-01 : f32
    %310 = vector.broadcast %cst_163 : f32 to vector<8x256xf32>
    %311 = arith.mulf %310, %309 : vector<8x256xf32>
    %312 = arith.maximumf %309, %311 : vector<8x256xf32>
    %c8_164 = arith.constant 8 : index
    %c0_165 = arith.constant 0 : index
    %313 = vector.load %arg12[%c8_164, %c0_165] : memref<16x256xf32, #tpu.memory_space<vmem>>, vector<8x256xf32>
    tpu.vector_store %arg12[%c8_164, %c0_165], %312 {strides = array<i32>} : memref<16x256xf32, #tpu.memory_space<vmem>>, vector<8x256xf32>,
    return
  }
}

</mosaic_0001>

<bundles_post_ra>
// kernel: tile.12
= control target key start
LH: loop header
LB: loop body
LE: loop exit
PB: predicated region body
PF: predicated region fallthrough
CT: control target
= control target key end

     0   :  { %vm39_vm0 = vcmask 64512   ;;  %s170_s0 = inlined_call_operand.vmem [shape: f32[8,9,1,1,4], index: 0, kind: input, shape index: {}]   ;;  %s171_s1 = inlined_call_operand.vmem [shape: f32[8,36], index: 1, kind: output, shape index: {}]  }
   0x1   :  { %v81_v0 = vld [vmem:[%s170_s0 + $0x20] sm:$0xf]  ;;  %v82_v1 = vld [vmem:[%s170_s0 + $0x1c] sm:$0xf]  ;;  %v83_v2 = vld [vmem:[%s170_s0 + $0x18] sm:$0xf] }
   0x2   :  { %7 = vst [vmem:[#allocation0 + $0x10] sm:$0xf] %v81_v0  ;;  %v84_v3 = vld [vmem:[%s170_s0 + $0x14] sm:$0xf]  ;;  %v85_v4 = vld [vmem:[%s170_s0 + $0x10] sm:$0xf] }
   0x3   :  { %11 = vst [vmem:[#allocation0 + $0x40] sm:$0xf] %v82_v1  ;;  %v86_v5 = vld [vmem:[%s170_s0 + $0xc] sm:$0xf]  ;;  %v87_v6 = vld [vmem:[%s170_s0 + $0x8] sm:$0xf] }
   0x4   :  { %15 = vst [vmem:[#allocation0 + $0x28] sm:$0xf] %v83_v2  ;;  %v88_v7 = vld [vmem:[%s170_s0 + $0x4] sm:$0xf]  ;;  %v36_v8 = vld [vmem:[%s170_s0] sm:$0xf] }
   0x5   :  { %19 = vst [vmem:[#allocation0 + $0x30] sm:$0xf] %v84_v3 }
   0x6   :  { %23 = vst [vmem:[#allocation0 + $0x20] sm:$0xf] %v85_v4 }
   0x7   :  { %27 = vst [vmem:[#allocation0 + $0x18] sm:$0xf] %v86_v5 }
   0x8   :  { %31 = vst [vmem:[#allocation0] sm:$0xf] %v87_v6 }
   0x9   :  { %35 = vst [vmem:[#allocation0 + $0x8] sm:$0xf] %v88_v7  ;;  %v77_v16 = vld [vmem:[#allocation0 + $0x10] sm:$0xf]  }
   0xa   :  { %37 = vst [vmem:[#allocation0 + $0x38] sm:$0xf] %v36_v8  ;;  %v72_v9 = vld [vmem:[#allocation0 + $0x40] sm:$0xf]  }
   0xb   :  { %v67_v10 = vld [vmem:[#allocation0 + $0x28] sm:$0xf]   ;;  %95 = vst.msk [vmem:[%s171_s1 + $0x1c] sm:$0xf] %vm39_vm0, %v72_v9  }
   0xc   :  { %v62_v11 = vld [vmem:[#allocation0 + $0x30] sm:$0xf]   ;;  %94 = vst.msk [vmem:[%s171_s1 + $0x18] sm:$0xf] %vm39_vm0, %v67_v10  }
   0xd   :  { %v57_v12 = vld [vmem:[#allocation0 + $0x20] sm:$0xf]   ;;  %93 = vst.msk [vmem:[%s171_s1 + $0x14] sm:$0xf] %vm39_vm0, %v62_v11  }
   0xe   :  { %v52_v13 = vld [vmem:[#allocation0 + $0x18] sm:$0xf]   ;;  %92 = vst.msk [vmem:[%s171_s1 + $0x10] sm:$0xf] %vm39_vm0, %v57_v12  }
   0xf   :  { %v47_v14 = vld [vmem:[#allocation0] sm:$0xf]   ;;  %91 = vst.msk [vmem:[%s171_s1 + $0xc] sm:$0xf] %vm39_vm0, %v52_v13  }
  0x10   :  { %v42_v15 = vld [vmem:[#allocation0 + $0x8] sm:$0xf]   ;;  %90 = vst.msk [vmem:[%s171_s1 + $0x8] sm:$0xf] %vm39_vm0, %v47_v14  }
  0x11   :  { %v38_v17 = vld [vmem:[#allocation0 + $0x38] sm:$0xf]   ;;  %89 = vst.msk [vmem:[%s171_s1 + $0x4] sm:$0xf] %vm39_vm0, %v42_v15  }
  0x12   :  { %40 = vst.msk [vmem:[%s171_s1] sm:$0xf] %vm39_vm0, %v38_v17  }
  0x13   :  { %96 = vst.msk [vmem:[%s171_s1 + $0x20] sm:$0xf] %vm39_vm0, %v77_v16  }

// kernel: unet_style_block.1
= control target key start
LH: loop header
LB: loop body
LE: loop exit
PB: predicated region body
PF: predicated region fallthrough
CT: control target
= control target key end

     0   :  { %17 = vsyncpa [#allocation5], 0  ;;  %s2436_s24 = smov [#allocation4]   ;;  %s3589_s0 = inlined_call_operand.vmem [shape: f32[2,8], index: 0, kind: input, shape index: {}]   ;;  %s3590_s1 = inlined_call_operand.vmem [shape: f32[8,36], index: 1, kind: input, shape index: {}]   ;;  %s3591_s2 = inlined_call_operand.vmem [shape: f32[1,36], index: 2, kind: input, shape index: {}]   ;;  %s3592_s3 = inlined_call_operand.vmem [shape: f32[8,256], index: 3, kind: input, shape index: {}]   ;;  %s3593_s4 = inlined_call_operand.vmem [shape: f32[8,256], index: 4, kind: input, shape index: {}]   ;;  %s3594_s5 = inlined_call_operand.vmem [shape: f32[9,256], index: 5, kind: input, shape index: {}]   ;;  %s3595_s6 = inlined_call_operand.vmem [shape: f32[8,36], index: 6, kind: input, shape index: {}]   ;;  %s3596_s7 = inlined_call_operand.vmem [shape: f32[8,36], index: 7, kind: input, shape index: {}]   ;;  %s3597_s8 = inlined_call_operand.vmem [shape: f32[8,1], index: 8, kind: input, shape index: {}]   ;;  %s3598_s9 = inlined_call_operand.vmem [shape: f32[8,1], index: 9, kind: input, shape index: {}]   ;;  %s3599_s10 = inlined_call_operand.vmem [shape: f32[8,1], index: 10, kind: input, shape index: {}]   ;;  %s3600_s11 = inlined_call_operand.vmem [shape: f32[8,1], index: 11, kind: input, shape index: {}]   ;;  %s3601_s12 = inlined_call_operand.vmem [shape: f32[16,256], index: 12, kind: output, shape index: {}]  }
   0x1   :  { %s23_s23 = sshll.u32 %s3589_s0, 4  ;;  %s24_s23 = int_to_ptr.vmem [resolvable:$true] %s23_s23 }
   0x2   :  { %26 = dma.vmem_to_smem %s24_s23, 32, %s2436_s24, [#allocation5]  }
   0x3   :  { %2434 = dma.done.wait [#allocation5], 32  }
   0x4   :  { %2435 = vsyncadd [#allocation5], 4294967264 }
   0x5   :  { %53 = sfence }
   0x6   :  { %v2517_v0 = vld [vmem:[%s3592_s3 + $0x8] sm:$0xff]  ;;  %v2522_v1 = vld [vmem:[%s3592_s3] sm:$0xff]  ;;  %s2437_s29 = smov 111   ;;  %s2438_s0 = smov 112   ;;  %vm134_vm0 = vcmask 293888   ;;  %v241_v63 = vlaneseq  ;;  %vm634_vm4 = vcmask 1043456  }
   0x7   :  { %568 = vrot.lane.b32.xlu1 %v2517_v0, %s2437_s29  ;;  %415 = vst [vmem:[#allocation2 + $0x88] sm:$0xf] %v2517_v0  ;;  %566 = vrot.lane.b32.xlu0 %v2522_v1, %s2437_s29  ;;  %v2535_v2 = vld [vmem:[%s3593_s4] sm:$0xff]  ;;  %s2381_s3 = sld [smem:[#allocation4 + $0x1]]  ;;  %v2541_v3 = vld [vmem:[%s3593_s4 + $0x8] sm:$0xff]  ;;  %s2439_s17 = smov 1  }
   0x8   :  { %414 = vst [vmem:[#allocation2 + $0x8] sm:$0xf] %v2522_v1  ;;  %524 = vrot.lane.b32.xlu2 %v2517_v0, %s2438_s0  ;;  %s2382_s14 = sld [smem:[#allocation4 + $0x2]]  ;;  %v2551_v4 = vld [vmem:[%s3590_s1] sm:$0xff]  ;;  %s2440_s20 = smov 127  }
   0x9   :  { %416 = vst [vmem:[#allocation3 + $0x88] sm:$0xf] %v2535_v2  ;;  %s2383_s4 = sld [smem:[#allocation4 + $0x3]]  ;;  %s2441_s21 = smov 15   ;;  %v2585_v19 = vld [vmem:[%s3591_s2] sm:$0x1] }
   0xa   :  { %417 = vst [vmem:[#allocation3 + $0x90] sm:$0xf] %v2541_v3  ;;  %s2442_s22 = smov 113   ;;  %s2384_s1 = sld [smem:[#allocation4 + $0x4]]  ;;  %v2616_v42 = vld [vmem:[%s3595_s6] sm:$0xff] }
   0xb   :  { %s2443_s23 = smov 17   ;;  %s62_s24 = sld [smem:[#allocation4]] }
   0xc   :  { %s2385_s25 = sld [smem:[#allocation4 + $0x5]]  ;;  %s2444_s26 = smov 16  }
   0xd   :  { %v67_v5 = vstv %s2381_s3  ;;  %s2386_s27 = sld [smem:[#allocation4 + $0x6]] }
   0xe   :  { %v68_v6 = vmul.f32 %v67_v5, %v2551_v4  ;;  %v76_v7 = vstv %s2382_s14  ;;  %s2387_s13 = sld [smem:[#allocation4 + $0x7]] }
   0xf   :  { %522 = vrot.lane.b32.xlu1 %v2522_v1, %s2438_s0  ;;  %372 = vrot.lane.b32.xlu0 %v2517_v0, %s2439_s17  ;;  %v77_v8 = vmul.f32 %v76_v7, %v2551_v4  ;;  %v85_v10 = vstv %s2383_s4  ;;  %s2389_s2 = sld [smem:[#allocation4 + $0x81]] }
  0x10   :  { %434 = vrot.lane.b32.xlu2 %v2522_v1, %s2440_s20  ;;  %70 = vst [vmem:[#allocation1] sm:$0xff] %v68_v6  ;;  %v86_v11 = vmul.f32 %v85_v10, %v2551_v4  ;;  %v94_v13 = vstv %s2384_s1  ;;  %s2392_s15 = sld [smem:[#allocation4 + $0x84]]  ;;  %v2647_v10 = vld [vmem:[%s3594_s5 + $0x10] ss:$8 sm:$0x3] }
  0x11   :  { %v95_v14 = vmul.f32 %v94_v13, %v2551_v4  ;;  %v63_v15 = vstv %s62_s24  ;;  %s2388_s16 = sld [smem:[#allocation4 + $0x80]]  ;;  %v582_v13 = vperm.slane %v2647_v10, 0 }
  0x12   :  { %v103_v17 = vstv %s2385_s25  ;;  %v64_v18 = vmul.f32 %v63_v15, %v2551_v4  ;;  %s2393_s6 = sld [smem:[#allocation4 + $0x85]]  ;;  %v420_v15 = vrot.slane %v2522_v1, 4 }
  0x13   :  { %v104_v20 = vmul.f32 %v103_v17, %v2551_v4  ;;  %v112_v23 = vstv %s2386_s27  ;;  %s2395_s18 = sld [smem:[#allocation4 + $0x87]] }
  0x14   :  { %v65_v21 = vadd.f32 %v64_v18, %v2585_v19  ;;  %v113_v25 = vmul.f32 %v112_v23, %v2551_v4  ;;  %v121_v28 = vstv %s2387_s13  ;;  %424 = vst [vmem:[#allocation2 + $0x28] sm:$0xf] %v420_v15 }
  0x15   :  { %v122_v30 = vmul.f32 %v121_v28, %v2551_v4  ;;  %v155_v33 = vstv %s2389_s2 }
  0x16   :  { %v156_v35 = vmul.f32 %v155_v33, %v2551_v4  ;;  %v182_v49 = vstv %s2392_s15 }
  0x17   :  { %436 = vrot.lane.b32.xlu1 %v2517_v0, %s2440_s20  ;;  %326 = vrot.lane.b32.xlu0 %v2522_v1, %s2441_s21  ;;  %v72_v9 = vld [vmem:[#allocation1 + $0x1] ss:$9 sm:$0xff]  ;;  %v183_v51 = vmul.f32 %v182_v49, %v2551_v4  ;;  %v151_v52 = vstv %s2388_s16 }
  0x18   :  { %478 = vrot.lane.b32.xlu2 %v2522_v1, %s2442_s22  ;;  %79 = vst [vmem:[#allocation1] sm:$0xff] %v77_v8  ;;  %v74_v24 = vadd.f32 %v72_v9, %v65_v21  ;;  %v152_v55 = vmul.f32 %v151_v52, %v2551_v4  ;;  %v191_v56 = vstv %s2393_s6  ;;  %v2642_v8 = vand.u32 127, %v241_v63 }
  0x19   :  { %v192_v58 = vmul.f32 %v191_v56, %v2551_v4 }
  0x1a   :  { %v153_v57 = vadd.f32 %v152_v55, %v2585_v19  ;;  %vm570_vm1 = vcmp.lt.s32.totalorder %v2642_v8, 111  ;;  %vm526_vm2 = vcmp.lt.s32.totalorder %v2642_v8, 112  ;;  %vm374_vm3 = vcmp.lt.s32.totalorder %v2642_v8, 1 }
  0x1b   :  { %vm438_vm5 = vcmp.lt.s32.totalorder %v2642_v8, 127  ;;  %vm482_vm6 = vcmp.lt.s32.totalorder %v2642_v8, 113  ;;  %vm243_vm7 = vcmp.lt.s32.totalorder %v2642_v8, 17  ;;  %vm286_vm8 = vcmp.lt.s32.totalorder %v2642_v8, 16 }
  0x1c   :  { %vm330_vm9 = vcmp.lt.s32.totalorder %v2642_v8, 15 }
  0x1f   :  { %480 = vrot.lane.b32.xlu1 %v2517_v0, %s2442_s22  ;;  %239 = vrot.lane.b32.xlu0 %v2517_v0, %s2443_s23  ;;  %v81_v12 = vld [vmem:[#allocation1 + $0x2] ss:$9 sm:$0xff] }
  0x20   :  { %370 = vrot.lane.b32.xlu2 %v2522_v1, %s2439_s17  ;;  %88 = vst [vmem:[#allocation1] sm:$0xff] %v86_v11  ;;  %v83_v26 = vadd.f32 %v81_v12, %v74_v24  ;;  %v209_v12 = vstv %s2395_s18 }
  0x27   :  { %282 = vrot.lane.b32.xlu1 %v2522_v1, %s2444_s26  ;;  %529 = vrot.lane.b32.xlu0 %v2535_v2, %s2438_s0  ;;  %v90_v16 = vld [vmem:[#allocation1 + $0x3] ss:$9 sm:$0xff] }
  0x28   :  { %284 = vrot.lane.b32.xlu2 %v2517_v0, %s2444_s26  ;;  %97 = vst [vmem:[#allocation1] sm:$0xff] %v95_v14  ;;  %v92_v29 = vadd.f32 %v90_v16, %v83_v26  ;;  %v583_v14 = vperm.slane %v2647_v10, 1  ;;  %v210_v16 = vmul.f32 %v209_v12, %v2551_v4 }
  0x2f   :  { %328 = vrot.lane.b32.xlu1 %v2517_v0, %s2441_s21  ;;  %443 = vrot.lane.b32.xlu0 %v2541_v3, %s2440_s20  ;;  %v99_v22 = vld [vmem:[#allocation1 + $0x4] ss:$9 sm:$0xff] }
  0x30   :  { %237 = vrot.lane.b32.xlu2 %v2522_v1, %s2443_s23  ;;  %106 = vst [vmem:[#allocation1] sm:$0xff] %v104_v20  ;;  %v101_v31 = vadd.f32 %v99_v22, %v92_v29  ;;  %v2667_v1 = vld [vmem:[%s3594_s5 + $0x7] ss:$8 sm:$0x3]  ;;  %v421_v29 = vrot.slane %v2517_v0, 4 }
  0x32   :  { %425 = vst [vmem:[#allocation2 + $0x40] sm:$0xf] %v421_v29 }
  0x37   :  { %573 = vrot.lane.b32.xlu1 %v2535_v2, %s2437_s29  ;;  %377 = vrot.lane.b32.xlu0 %v2535_v2, %s2439_s17  ;;  %v108_v27 = vld [vmem:[#allocation1 + $0x5] ss:$9 sm:$0xff] }
  0x38   :  { %575 = vrot.lane.b32.xlu2 %v2541_v3, %s2437_s29  ;;  %115 = vst [vmem:[#allocation1] sm:$0xff] %v113_v25  ;;  %s2390_s29 = sld [smem:[#allocation4 + $0x82]]  ;;  %v110_v34 = vadd.f32 %v108_v27, %v101_v31  ;;  %v2672_v25 = vld [vmem:[%s3594_s5 + $0x3] ss:$8 sm:$0x3]  ;;  %v539_v31 = vperm.slane %v2667_v1, 1 }
  0x39   :  { %v387_v33 = vperm.slane %v2672_v25, 1 }
  0x3e   :  { %v164_v38 = vstv %s2390_s29 }
  0x3f   :  { %531 = vrot.lane.b32.xlu1 %v2541_v3, %s2438_s0  ;;  %v117_v32 = vld [vmem:[#allocation1 + $0x6] ss:$9 sm:$0xff]  ;;  %s2391_s0 = sld [smem:[#allocation4 + $0x83]]  ;;  %v165_v40 = vmul.f32 %v164_v38, %v2551_v4 }
  0x40   :  { %441 = vrot.lane.b32.xlu2 %v2535_v2, %s2440_s20  ;;  %124 = vst [vmem:[#allocation1] sm:$0xff] %v122_v30  ;;  %v119_v36 = vadd.f32 %v117_v32, %v110_v34  ;;  %v538_v30 = vperm.slane %v2667_v1, 0  ;;  %v386_v32 = vperm.slane %v2672_v25, 0 }
  0x45   :  { %v173_v44 = vstv %s2391_s0 }
  0x46   :  { %v174_v46 = vmul.f32 %v173_v44, %v2551_v4 }
  0x47   :  { %485 = vrot.lane.b32.xlu1 %v2535_v2, %s2442_s22  ;;  %v126_v37 = vld [vmem:[#allocation1 + $0x7] ss:$9 sm:$0xff] }
  0x48   :  { %487 = vrot.lane.b32.xlu2 %v2541_v3, %s2442_s22  ;;  %158 = vst [vmem:[#allocation1] sm:$0xff] %v156_v35  ;;  %v128_v39 = vadd.f32 %v126_v37, %v119_v36 }
  0x4a   :  { %v130_v41 = vperm.slane %v128_v39, 0 }
  0x4c   :  { %v2619_v45 = vmul.f32 %v130_v41, %v2616_v42 }
  0x4e   :  { %v133_v47 = vmul.f32 %v2619_v45, %v2619_v45 }
  0x4f   :  { %379 = vrot.lane.b32.xlu1 %v2541_v3, %s2439_s17  ;;  %v160_v43 = vld [vmem:[#allocation1 + $0x1] ss:$9 sm:$0xff]  ;;  %s2394_s17 = sld [smem:[#allocation4 + $0x86]] }
  0x50   :  { %289 = vrot.lane.b32.xlu2 %v2535_v2, %s2444_s26  ;;  %167 = vst [vmem:[#allocation1] sm:$0xff] %v165_v40  ;;  %v135_v50 = vsel %vm134_vm0, %v133_v47, 0.0  ;;  %v162_v61 = vadd.f32 %v160_v43, %v153_v57 }
  0x55   :  { %v200_v62 = vstv %s2394_s17 }
  0x56   :  { %v201_v6 = vmul.f32 %v200_v62, %v2551_v4 }
  0x57   :  { %333 = vrot.lane.b32.xlu1 %v2535_v2, %s2441_s21  ;;  %v169_v48 = vld [vmem:[#allocation1 + $0x2] ss:$9 sm:$0xff] }
  0x58   :  { %335 = vrot.lane.b32.xlu2 %v2541_v3, %s2441_s21  ;;  %176 = vst [vmem:[#allocation1] sm:$0xff] %v174_v46  ;;  %v171_v5 = vadd.f32 %v169_v48, %v162_v61 }
  0x5f   :  { %248 = vrot.lane.b32.xlu1 %v2541_v3, %s2443_s23  ;;  %v178_v54 = vld [vmem:[#allocation1 + $0x3] ss:$9 sm:$0xff] }
  0x60   :  { %185 = vst [vmem:[#allocation1] sm:$0xff] %v183_v51  ;;  %v180_v11 = vadd.f32 %v178_v54, %v171_v5 }
  0x61   :  { %136 = vadd.xlane.f32.xlu0 %v135_v50  ;;  %v2706_v50 = vld [vmem:[%s3594_s5 + $0x5] ss:$8 sm:$0x3] }
  0x62   :  { %v2632_v53 = vpop.permute.xlu2 %524 }
  0x67   :  { %v187_v60 = vld [vmem:[#allocation1 + $0x4] ss:$9 sm:$0xff] }
  0x68   :  { %194 = vst [vmem:[#allocation1] sm:$0xff] %v192_v58  ;;  %v189_v17 = vadd.f32 %v187_v60, %v180_v11  ;;  %v450_v58 = vperm.slane %v2706_v50, 0  ;;  %v451_v60 = vperm.slane %v2706_v50, 1 }
  0x6a   :  { %v2637_v59 = vpop.permute.xlu2 %434 }
  0x6f   :  { %v196_v9 = vld [vmem:[#allocation1 + $0x5] ss:$9 sm:$0xff] }
  0x70   :  { %203 = vst [vmem:[#allocation1] sm:$0xff] %v201_v6  ;;  %v198_v26 = vadd.f32 %v196_v9, %v189_v17  ;;  %v2741_v17 = vld [vmem:[%s3594_s5 + $0x6] ss:$8 sm:$0x3] }
  0x72   :  { %v2640_v7 = vpop.permute.xlu2 %478 }
  0x75   :  { %291 = vrot.lane.b32.xlu0 %v2541_v3, %s2444_s26 }
  0x77   :  { %v205_v4 = vld [vmem:[#allocation1 + $0x6] ss:$9 sm:$0xff] }
  0x78   :  { %212 = vst [vmem:[#allocation1] sm:$0xff] %v210_v16  ;;  %v207_v34 = vadd.f32 %v205_v4, %v198_v26 }
  0x79   :  { %v569_v18 = vpop.permute.xlu1 %568  ;;  %v567_v19 = vpop.permute.xlu0 %566 }
  0x7a   :  { %v571_v20 = vsel %vm570_vm1, %v567_v19, %v569_v18  ;;  %v572_v21 = vsel %vm570_vm1, %v569_v18, %v567_v19  ;;  %v371_v22 = vpop.permute.xlu2 %370  ;;  %v2747_v18 = vld [vmem:[%s3594_s5] ss:$8 sm:$0x3] }
  0x7b   :  { %v586_v23 = vmul.f32 %v582_v13, %v571_v20  ;;  %v587_v24 = vmul.f32 %v583_v14, %v572_v21  ;;  %v254_v4 = vperm.slane %v2747_v18, 0  ;;  %v255_v26 = vperm.slane %v2747_v18, 1 }
  0x7d   :  { %590 = vst [vmem:[#allocation2 + $0x20] sm:$0xf] %v586_v23  ;;  %v596_v27 = vrot.slane %v586_v23, 4  ;;  %v597_v28 = vrot.slane %v587_v24, 4  ;;  %246 = vrot.lane.b32.xlu0 %v2535_v2, %s2443_s23 }
  0x7e   :  { %591 = vst [vmem:[#allocation2 + $0x48] sm:$0xf] %v587_v24  ;;  %v495_v24 = vperm.slane %v2741_v17, 1 }
  0x7f   :  { %600 = vst [vmem:[#allocation2 + $0x70] sm:$0xf] %v596_v27  ;;  %v214_v47 = vld [vmem:[#allocation1 + $0x7] ss:$9 sm:$0xff] }
  0x80   :  { %601 = vst [vmem:[#allocation2 + $0x90] sm:$0xf] %v597_v28  ;;  %v216_v48 = vadd.f32 %v214_v47, %v207_v34 }
  0x81   :  { %v523_v35 = vpop.permute.xlu1 %522  ;;  %v373_v36 = vpop.permute.xlu0 %372 }
  0x82   :  { %v527_v0 = vsel %vm526_vm2, %v523_v35, %v2632_v53  ;;  %v528_v37 = vsel %vm526_vm2, %v2632_v53, %v523_v35  ;;  %v375_v38 = vsel %vm374_vm3, %v371_v22, %v373_v36  ;;  %v376_v39 = vsel %vm374_vm3, %v373_v36, %v371_v22  ;;  %v2693_v40 = vpop.permute.xlu2 %284 }
  0x83   :  { %v542_v41 = vmul.f32 %v538_v30, %v527_v0  ;;  %v543_v43 = vmul.f32 %v539_v31, %v528_v37  ;;  %v390_v44 = vmul.f32 %v386_v32, %v376_v39  ;;  %v391_v46 = vmul.f32 %v387_v33, %v375_v38 }
  0x84   :  { %v619_v49 = vld [vmem:[#allocation2 + $0x20] sm:$0xf]  ;;  %v218_v55 = vperm.slane %v216_v48, 0  ;;  %v494_v22 = vperm.slane %v2741_v17, 0 }
  0x85   :  { %v548_v51 = vrot.slane %v542_v41, 4  ;;  %v549_v52 = vrot.slane %v543_v43, 4  ;;  %562 = vst [vmem:[#allocation2 + $0x98] sm:$0xf0] %v542_v41  ;;  %v396_v53 = vrot.slane %v390_v44, 4  ;;  %v397_v54 = vrot.slane %v391_v46, 4 }
  0x86   :  { %563 = vst [vmem:[#allocation2 + $0x60] sm:$0xf0] %v543_v43  ;;  %v636_v56 = vsel %vm634_vm4, %v619_v49, 0  ;;  %v2715_v61 = vmul.f32 %v218_v55, %v2616_v42  ;;  %v620_v55 = vld [vmem:[#allocation2 + $0x48] sm:$0xf] }
  0x87   :  { %552 = vst [vmem:[#allocation2 + $0x58] sm:$0xf0] %v548_v51  ;;  %v2709_v57 = vand.u32 4294901760, %v636_v56 }
  0x88   :  { %553 = vst [vmem:[#allocation2 + $0x10] sm:$0xf0] %v549_v52  ;;  %v221_v6 = vmul.f32 %v2715_v61, %v2715_v61 }
  0x89   :  { %400 = vst [vmem:[#allocation2 + $0x30] sm:$0xf0] %v396_v53  ;;  %653 = vmatpush.msra.mxu0 %v2709_v57  ;;  %761 = vmatpush.msra.mxu3 %v2709_v57  ;;  %v437_v62 = vpop.permute.xlu1 %436  ;;  %v2719_v63 = vpop.permute.xlu0 %326  ;;  %v2722_v5 = vsub.f32 %v636_v56, %v2709_v57 }
  0x8a   :  { %401 = vst [vmem:[#allocation2 + $0x68] sm:$0xf0] %v397_v54  ;;  %v439_v42 = vsel %vm438_vm5, %v2637_v59, %v437_v62  ;;  %v440_v9 = vsel %vm438_vm5, %v437_v62, %v2637_v59  ;;  %v238_v16 = vpop.permute.xlu2 %237  ;;  %v222_v59 = vsel %vm134_vm0, %v221_v6, 0.0 }
  0x8b   :  { %410 = vst [vmem:[#allocation2 + $0x78] sm:$0xf0] %v390_v44  ;;  %v454_v11 = vmul.f32 %v450_v58, %v439_v42  ;;  %v455_v12 = vmul.f32 %v451_v60, %v440_v9  ;;  %730 = vmatpush.msra.mxu2 %v2722_v5  ;;  %v684_v15 = vand.u32 4294901760, %v2722_v5  ;;  %223 = vadd.xlane.f32.xlu2 %v222_v59  ;;  %v2803_v9 = vld [vmem:[%s3594_s5 + $0x2] ss:$8 sm:$0x3] }
  0x8c   :  { %411 = vst [vmem:[#allocation2 + $0x80] sm:$0xf0] %v391_v46 }
  0x8d   :  { %v460_v19 = vrot.slane %v454_v11, 4  ;;  %v461_v20 = vrot.slane %v455_v12, 4  ;;  %474 = vst [vmem:[#allocation2 + $0x28] sm:$0xf0] %v454_v11  ;;  %v685_v21 = vsub.f32 %v2722_v5, %v684_v15 }
  0x8e   :  { %475 = vst [vmem:[#allocation2 + $0x40] sm:$0xf0] %v455_v12 }
  0x8f   :  { %464 = vst [vmem:[#allocation2 + $0x8] sm:$0xf0] %v460_v19  ;;  %v686_v23 = vand.u32 4294901760, %v685_v21 }
  0x90   :  { %465 = vst [vmem:[#allocation2 + $0x88] sm:$0xf0] %v461_v20  ;;  %v428_v20 = vrot.slane %v2535_v2, 4 }
  0x91   :  { %687 = vmatpush.msra.mxu1 %v686_v23  ;;  %v481_v27 = vpop.permute.xlu1 %480  ;;  %v240_v28 = vpop.permute.xlu0 %239 }
  0x92   :  { %v483_v29 = vsel %vm482_vm6, %v2640_v7, %v481_v27  ;;  %v484_v34 = vsel %vm482_vm6, %v481_v27, %v2640_v7  ;;  %v244_v35 = vsel %vm243_vm7, %v238_v16, %v240_v28  ;;  %v245_v36 = vsel %vm243_vm7, %v240_v28, %v238_v16  ;;  %v2779_v7 = vld [vmem:[%s3594_s5 + $0x1] ss:$8 sm:$0x3]  ;;  %v2781_v44 = vpop.permute.xlu2 %575  ;;  %432 = vst [vmem:[#allocation3 + $0x40] sm:$0xf] %v428_v20 }
  0x93   :  { %v498_v0 = vmul.f32 %v494_v22, %v483_v29  ;;  %v499_v37 = vmul.f32 %v495_v24, %v484_v34  ;;  %v258_v38 = vmul.f32 %v254_v4, %v245_v36  ;;  %v259_v39 = vmul.f32 %v255_v26, %v244_v35 }
  0x94   :  { %v298_v48 = vperm.slane %v2779_v7, 0  ;;  %v299_v49 = vperm.slane %v2779_v7, 1  ;;  %v639_v16 = vsel %vm634_vm4, %v620_v55, 0  ;;  %v342_v27 = vperm.slane %v2803_v9, 0 }
  0x95   :  { %502 = vst [vmem:[#allocation2 + $0x58] sm:$0xf] %v498_v0  ;;  %v508_v41 = vrot.slane %v498_v0, 4  ;;  %v509_v43 = vrot.slane %v499_v37, 4  ;;  %v268_v47 = vrot.slane %v258_v38, 4  ;;  %v269_v51 = vrot.slane %v259_v39, 4 }
  0x96   :  { %503 = vst [vmem:[#allocation2 + $0x10] sm:$0xf] %v499_v37  ;;  %v615_v46 = vld [vmem:[#allocation2 + $0x8] sm:$0xff]  ;;  %v343_v28 = vperm.slane %v2803_v9, 1  ;;  %v2821_v34 = vand.u32 4294901760, %v639_v16  ;;  %v429_v35 = vrot.slane %v2541_v3, 4 }
  0x97   :  { %512 = vst [vmem:[#allocation2 + $0x98] sm:$0xf] %v508_v41  ;;  %v2786_v52 = vand.u32 4294901760, %v615_v46 }
  0x98   :  { %513 = vst [vmem:[#allocation2 + $0x60] sm:$0xf] %v509_v43 }
  0x99   :  { %262 = vst [vmem:[#allocation2] sm:$0xf] %v258_v38  ;;  %v283_v53 = vpop.permute.xlu1 %282  ;;  %v2788_v54 = vpop.permute.xlu0 %529  ;;  %v2806_v12 = vsub.f32 %v615_v46, %v2786_v52 }
  0x9a   :  { %263 = vst [vmem:[#allocation2 + $0x38] sm:$0xf] %v259_v39  ;;  %v287_v56 = vsel %vm286_vm8, %v283_v53, %v2693_v40  ;;  %v288_v62 = vsel %vm286_vm8, %v2693_v40, %v283_v53  ;;  %v442_v23 = vpop.permute.xlu2 %441  ;;  %v616_v39 = vld [vmem:[#allocation2 + $0x88] sm:$0xff] }
  0x9b   :  { %272 = vst [vmem:[#allocation2 + $0x50] sm:$0xf] %v268_v47  ;;  %v302_v6 = vmul.f32 %v298_v48, %v288_v62  ;;  %v303_v42 = vmul.f32 %v299_v49, %v287_v56  ;;  %v696_v2 = vand.u32 4294901760, %v2806_v12  ;;  %v2856_v62 = vsub.f32 %v639_v16, %v2821_v34 }
  0x9c   :  { %273 = vst [vmem:[#allocation2 + $0x18] sm:$0xf] %v269_v51  ;;  %v617_v11 = vld [vmem:[#allocation2 + $0x58] sm:$0xff] }
  0x9d   :  { %v308_v40 = vrot.slane %v302_v6, 4  ;;  %v309_v59 = vrot.slane %v303_v42, 4  ;;  %322 = vst [vmem:[#allocation2 + $0x50] sm:$0xf0] %v302_v6  ;;  %v2809_v19 = vand.u32 4294901760, %v617_v11  ;;  %v618_v21 = vld [vmem:[#allocation2 + $0x10] sm:$0xff]  ;;  %v697_v56 = vsub.f32 %v2806_v12, %v696_v2 }
  0x9e   :  { %323 = vst [vmem:[#allocation2 + $0x18] sm:$0xf0] %v303_v42  ;;  %v2827_v38 = vand.u32 4294901760, %v618_v21  ;;  %v2858_v6 = vand.u32 4294901760, %v616_v39 }
  0x9f   :  { %312 = vst [vmem:[#allocation2] sm:$0xf0] %v308_v40  ;;  %655 = vmatpush.msra.mxu0 %v2809_v19  ;;  %763 = vmatpush.msra.mxu3 %v2809_v19  ;;  %v2818_v29 = vsub.f32 %v617_v11, %v2809_v19  ;;  %v698_v16 = vand.u32 4294901760, %v697_v56 }
  0xa0   :  { %313 = vst [vmem:[#allocation2 + $0x38] sm:$0xf0] %v309_v59  ;;  %v2863_v20 = vsub.f32 %v618_v21, %v2827_v38 }
  0xa1   :  { %v329_v36 = vpop.permute.xlu1 %328  ;;  %733 = vmatpush.msra.mxu2 %v2818_v29  ;;  %v444_v0 = vpop.permute.xlu0 %443  ;;  %657 = vmatpush.msra.mxu0 %v2786_v52  ;;  %v690_v37 = vand.u32 4294901760, %v2818_v29  ;;  %433 = vst [vmem:[#allocation3 + $0x8] sm:$0xf] %v429_v35  ;;  %v882_v35 = vand.u32 4294901760, %v2856_v62 }
  0xa2   :  { %v331_v41 = vsel %vm330_vm9, %v2719_v63, %v329_v36  ;;  %v332_v3 = vsel %vm330_vm9, %v329_v36, %v2719_v63  ;;  %v445_v43 = vsel %vm438_vm5, %v442_v23, %v444_v0  ;;  %v446_v46 = vsel %vm438_vm5, %v444_v0, %v442_v23  ;;  %765 = vmatpush.msra.mxu3 %v2786_v52  ;;  %v488_v1 = vpop.permute.xlu2 %487 }
  0xa3   :  { %v346_v47 = vmul.f32 %v342_v27, %v332_v3  ;;  %v347_v51 = vmul.f32 %v343_v28, %v331_v41  ;;  %v456_v53 = vmul.f32 %v450_v58, %v445_v43  ;;  %v457_v63 = vmul.f32 %v451_v60, %v446_v46  ;;  %736 = vmatpush.msra.mxu2 %v2806_v12 }
  0xa4   :  { %v691_v55 = vsub.f32 %v2818_v29, %v690_v37  ;;  %v2867_v36 = vsub.f32 %v616_v39, %v2858_v6 }
  0xa5   :  { %350 = vst [vmem:[#allocation2 + $0x30] sm:$0xf] %v346_v47  ;;  %v356_v58 = vrot.slane %v346_v47, 4  ;;  %v357_v50 = vrot.slane %v347_v51, 4  ;;  %v468_v60 = vrot.slane %v456_v53, 4  ;;  %v469_v42 = vrot.slane %v457_v63, 4 }
  0xa6   :  { %351 = vst [vmem:[#allocation2 + $0x68] sm:$0xf] %v347_v51  ;;  %v692_v11 = vand.u32 4294901760, %v691_v55  ;;  %v611_v40 = vld [vmem:[#allocation2] sm:$0xff]  ;;  %v888_v47 = vand.u32 4294901760, %v2863_v20  ;;  %v883_v55 = vsub.f32 %v2856_v62, %v882_v35 }
  0xa7   :  { %360 = vst [vmem:[#allocation2 + $0x78] sm:$0xf] %v356_v58  ;;  %v2860_v59 = vand.u32 4294901760, %v611_v40  ;;  %v612_v23 = vld [vmem:[#allocation2 + $0x38] sm:$0xff] }
  0xa8   :  { %361 = vst [vmem:[#allocation2 + $0x80] sm:$0xf] %v357_v50  ;;  %693 = vmatpush.msra.mxu1 %v692_v11  ;;  %v2869_v41 = vand.u32 4294901760, %v612_v23 }
  0xa9   :  { %472 = vst [vmem:[#allocation3 + $0x88] sm:$0xf0] %v468_v60  ;;  %v574_v0 = vpop.permute.xlu1 %573  ;;  %v2878_v43 = vsub.f32 %v611_v40, %v2860_v59  ;;  %v889_v60 = vsub.f32 %v2863_v20, %v888_v47  ;;  %v378_v17 = vpop.permute.xlu0 %377 }
  0xaa   :  { %473 = vst [vmem:[#allocation3 + $0x90] sm:$0xf0] %v469_v42  ;;  %v577_v3 = vsel %vm570_vm1, %v574_v0, %v2781_v44  ;;  %v578_v21 = vsel %vm570_vm1, %v2781_v44, %v574_v0  ;;  %699 = vmatpush.msra.mxu1 %v698_v16  ;;  %v894_v44 = vand.u32 4294901760, %v2867_v36 }
  0xab   :  { %476 = vst [vmem:[#allocation3 + $0x40] sm:$0xf0] %v456_v53  ;;  %v588_v39 = vmul.f32 %v582_v13, %v577_v3  ;;  %v589_v46 = vmul.f32 %v583_v14, %v578_v21  ;;  %v2892_v13 = vsub.f32 %v612_v23, %v2869_v41  ;;  %v708_v14 = vand.u32 4294901760, %v2878_v43 }
  0xac   :  { %477 = vst [vmem:[#allocation3 + $0x8] sm:$0xf0] %v457_v63  ;;  %v613_v51 = vld [vmem:[#allocation2 + $0x30] sm:$0xff]  ;;  %v895_v42 = vsub.f32 %v2867_v36, %v894_v44  ;;  %v884_v23 = vand.u32 4294901760, %v883_v55 }
  0xad   :  { %592 = vst [vmem:[#allocation3 + $0x60] sm:$0xf] %v588_v39  ;;  %v604_v56 = vrot.slane %v588_v39, 4  ;;  %v605_v58 = vrot.slane %v589_v46, 4  ;;  %v2889_v53 = vand.u32 4294901760, %v613_v51  ;;  %v614_v50 = vld [vmem:[#allocation2 + $0x68] sm:$0xff] }
  0xae   :  { %593 = vst [vmem:[#allocation3 + $0x58] sm:$0xf] %v589_v46  ;;  %v2894_v10 = vand.u32 4294901760, %v614_v50  ;;  %v906_v0 = vand.u32 4294901760, %v2892_v13  ;;  %v709_v46 = vsub.f32 %v2878_v43, %v708_v14  ;;  %v896_v5 = vand.u32 4294901760, %v895_v42 }
  0xaf   :  { %608 = vst [vmem:[#allocation3 + $0x98] sm:$0xf] %v604_v56  ;;  %659 = vmatpush.msra.mxu0 %v2889_v53  ;;  %767 = vmatpush.msra.mxu3 %v2889_v53  ;;  %v701_v63 = vsub.f32 %v613_v51, %v2889_v53  ;;  %v890_v56 = vand.u32 4294901760, %v889_v60 }
  0xb0   :  { %609 = vst [vmem:[#allocation3 + $0x48] sm:$0xf] %v605_v58  ;;  %v2907_v11 = vsub.f32 %v614_v50, %v2894_v10 }
  0xb1   :  { %v532_v40 = vpop.permute.xlu1 %531  ;;  %661 = vmatpush.msra.mxu0 %v2860_v59  ;;  %739 = vmatpush.msra.mxu2 %v701_v63  ;;  %v702_v16 = vand.u32 4294901760, %v701_v63 }
  0xb2   :  { %v533_v3 = vsel %vm526_vm2, %v2788_v54, %v532_v40  ;;  %v534_v21 = vsel %vm526_vm2, %v532_v40, %v2788_v54  ;;  %769 = vmatpush.msra.mxu3 %v2860_v59  ;;  %v900_v39 = vand.u32 4294901760, %v2907_v11 }
  0xb3   :  { %791 = vmatpush.msrb.mxu0 %v684_v15  ;;  %v544_v51 = vmul.f32 %v538_v30, %v533_v3  ;;  %v545_v55 = vmul.f32 %v539_v31, %v534_v21  ;;  %742 = vmatpush.msra.mxu2 %v2878_v43  ;;  %v703_v54 = vsub.f32 %v701_v63, %v702_v16 }
  0xb4   :  { %885 = vmatpush.msrb.mxu3 %v884_v23  ;;  %v901_v15 = vsub.f32 %v2907_v11, %v900_v39  ;;  %v907_v43 = vsub.f32 %v2892_v13, %v906_v0 }
  0xb5   :  { %795 = vmatpush.msrb.mxu0 %v690_v37  ;;  %851 = vmatpush.msrb.mxu2 %v2821_v34  ;;  %v556_v58 = vrot.slane %v544_v51, 4  ;;  %v557_v30 = vrot.slane %v545_v55, 4  ;;  %564 = vst [vmem:[#allocation3 + $0x50] sm:$0xf0] %v544_v51  ;;  %v704_v31 = vand.u32 4294901760, %v703_v54  ;;  %v710_v37 = vand.u32 4294901760, %v709_v46 }
  0xb6   :  { %891 = vmatpush.msrb.mxu3 %v890_v56  ;;  %565 = vst [vmem:[#allocation3 + $0x10] sm:$0xf0] %v545_v55  ;;  %v902_v29 = vand.u32 4294901760, %v901_v15  ;;  %v908_v63 = vand.u32 4294901760, %v907_v43 }
  0xb7   :  { %799 = vmatpush.msrb.mxu0 %v696_v2  ;;  %853 = vmatpush.msrb.mxu2 %v2827_v38  ;;  %560 = vst [vmem:[#allocation3 + $0x80] sm:$0xf0] %v556_v58  ;;  %v629_v58 = vld [vmem:[#allocation3 + $0x60] sm:$0xf] }
  0xb8   :  { %897 = vmatpush.msrb.mxu3 %v896_v5  ;;  %705 = vmatpush.msra.mxu1 %v704_v31  ;;  %561 = vst [vmem:[#allocation3 + $0x78] sm:$0xf0] %v557_v30 }
  0xb9   :  { %803 = vmatpush.msrb.mxu0 %v702_v16  ;;  %855 = vmatpush.msrb.mxu2 %v2858_v6  ;;  %v486_v50 = vpop.permute.xlu1 %485 }
  0xba   :  { %903 = vmatpush.msrb.mxu3 %v902_v29  ;;  %711 = vmatpush.msra.mxu1 %v710_v37  ;;  %v489_v60 = vsel %vm482_vm6, %v486_v50, %v488_v1  ;;  %v490_v12 = vsel %vm482_vm6, %v488_v1, %v486_v50 }
  0xbb   :  { %807 = vmatpush.msrb.mxu0 %v708_v14  ;;  %v500_v2 = vmul.f32 %v494_v22, %v489_v60  ;;  %v501_v42 = vmul.f32 %v495_v24, %v490_v12  ;;  %857 = vmatpush.msrb.mxu2 %v2894_v10 }
  0xbc   :  { %825 = vmatpush.msrb.mxu1 %v2709_v57  ;;  %909 = vmatpush.msrb.mxu3 %v908_v63  ;;  %v290_v57 = vpop.permute.xlu2 %289 }
  0xbd   :  { %504 = vst [vmem:[#allocation3 + $0x80] sm:$0xf] %v500_v2  ;;  %v516_v40 = vrot.slane %v500_v2, 4  ;;  %v517_v23 = vrot.slane %v501_v42, 4  ;;  %859 = vmatpush.msrb.mxu2 %v2869_v41  ;;  %v625_v2 = vld [vmem:[#allocation3 + $0x88] sm:$0xff] }
  0xbe   :  { %827 = vmatpush.msrb.mxu1 %v2809_v19  ;;  %505 = vst [vmem:[#allocation3 + $0x78] sm:$0xf] %v501_v42 }
  0xbf   :  { %520 = vst [vmem:[#allocation3 + $0x50] sm:$0xf] %v516_v40 }
  0xc0   :  { %829 = vmatpush.msrb.mxu1 %v2786_v52  ;;  %521 = vst [vmem:[#allocation3 + $0x10] sm:$0xf] %v517_v23 }
  0xc1   :  { %v380_v22 = vpop.permute.xlu1 %379 }
  0xc2   :  { %831 = vmatpush.msrb.mxu1 %v2889_v53  ;;  %v381_v24 = vsel %vm374_vm3, %v378_v17, %v380_v22  ;;  %v382_v19 = vsel %vm374_vm3, %v380_v22, %v378_v17 }
  0xc3   :  { %v392_v14 = vmul.f32 %v386_v32, %v382_v19  ;;  %v393_v52 = vmul.f32 %v387_v33, %v381_v24 }
  0xc4   :  { %833 = vmatpush.msrb.mxu1 %v2860_v59  ;;  %v336_v53 = vpop.permute.xlu2 %335  ;;  %v627_v43 = vld [vmem:[#allocation3 + $0x80] sm:$0xff] }
  0xc5   :  { %v404_v16 = vrot.slane %v392_v14, 4  ;;  %v405_v3 = vrot.slane %v393_v52, 4  ;;  %412 = vst [vmem:[#allocation3] sm:$0xf0] %v392_v14  ;;  %v2983_v42 = vand.u32 4294901760, %v627_v43 }
  0xc6   :  { %413 = vst [vmem:[#allocation3 + $0x20] sm:$0xf0] %v393_v52 }
  0xc7   :  { %408 = vst [vmem:[#allocation3 + $0x70] sm:$0xf0] %v404_v16 }
  0xc8   :  { %409 = vst [vmem:[#allocation3 + $0x30] sm:$0xf0] %v405_v3 }
  0xc9   :  { %v334_v21 = vpop.permute.xlu1 %333 }
  0xca   :  { %v337_v46 = vsel %vm330_vm9, %v334_v21, %v336_v53  ;;  %v338_v59 = vsel %vm330_vm9, %v336_v53, %v334_v21 }
  0xcb   :  { %v348_v32 = vmul.f32 %v342_v27, %v338_v59  ;;  %v349_v25 = vmul.f32 %v343_v28, %v337_v46  ;;  %v1046_v27 = vsel %vm634_vm4, %v629_v58, 0 }
  0xcc   :  { %v2972_v31 = vand.u32 4294901760, %v1046_v27 }
  0xcd   :  { %352 = vst [vmem:[#allocation3 + $0x70] sm:$0xf] %v348_v32  ;;  %v364_v33 = vrot.slane %v348_v32, 4  ;;  %v365_v51 = vrot.slane %v349_v25, 4 }
  0xce   :  { %353 = vst [vmem:[#allocation3 + $0x30] sm:$0xf] %v349_v25  ;;  %v2987_v22 = vsub.f32 %v1046_v27, %v2972_v31 }
  0xcf   :  { %368 = vst [vmem:[#allocation3] sm:$0xf] %v364_v33  ;;  %v630_v33 = vld [vmem:[#allocation3 + $0x58] sm:$0xf] }
  0xd0   :  { %369 = vst [vmem:[#allocation3 + $0x20] sm:$0xf] %v365_v51  ;;  %v1094_v52 = vand.u32 4294901760, %v2987_v22 }
  0xd1   :  { %v249_v7 = vpop.permute.xlu1 %248 }
  0xd4   :  { %v137_v55 = vpop.xlane.xlu0 %136 }
  0xd5   :  { %v138_v56 = vadd.f32 1e-08, %v137_v55  ;;  %v1049_v55 = vsel %vm634_vm4, %v630_v33, 0  ;;  %v624_v27 = vld [vmem:[#allocation3 + $0x30] sm:$0xff] }
  0xd7   :  { %2416 = vrsqrt.f32 %v138_v56  ;;  %vm145_vm11 = vweird.f32 %v138_v56 }
  0xdd   :  { %v2417_v54 = vpop.eup %2416 }
  0xde   :  { %v140_v5 = vmul.f32 %v2417_v54, %v138_v56  ;;  %vm146_vm10 = vweird.f32 %v2417_v54 }
  0xdf   :  { %vm147_vm12 = vmor %vm145_vm11, %vm146_vm10 }
  0xe0   :  { %v141_v15 = vmul.f32 %v2417_v54, %v140_v5 }
  0xe2   :  { %v142_v30 = vmul.f32 0.5, %v141_v15 }
  0xe4   :  { %v143_v1 = vsub.f32 1.5, %v142_v30 }
  0xe6   :  { %v144_v9 = vmul.f32 %v2417_v54, %v143_v1 }
  0xe7   :  { %v292_v28 = vpop.permute.xlu0 %291 }
  0xe8   :  { %v148_v29 = vsel %vm147_vm12, %v2417_v54, %v144_v9  ;;  %v293_v37 = vsel %vm286_vm8, %v290_v57, %v292_v28  ;;  %v294_v50 = vsel %vm286_vm8, %v292_v28, %v290_v57  ;;  %v623_v57 = vld [vmem:[#allocation3 + $0x70] sm:$0xff]  ;;  %v628_v54 = vld [vmem:[#allocation3 + $0x78] sm:$0xff] }
  0xe9   :  { %v149_v63 = vmul.f32 %v148_v29, %v2619_v45  ;;  %v304_v60 = vmul.f32 %v298_v48, %v294_v50  ;;  %v305_v12 = vmul.f32 %v299_v49, %v293_v37  ;;  %v2991_v45 = vand.u32 4294901760, %v625_v2 }
  0xea   :  { %v2998_v49 = vsub.f32 %v627_v43, %v2983_v42  ;;  %v3000_v19 = vand.u32 4294901760, %v623_v57  ;;  %v3061_v58 = vand.u32 4294901760, %v628_v54  ;;  %v3092_v50 = vand.u32 4294901760, %v624_v27 }
  0xeb   :  { %v632_v40 = vsel %vm134_vm0, %v149_v63, 0  ;;  %v316_v23 = vrot.slane %v304_v60, 4  ;;  %v317_v17 = vrot.slane %v305_v12, 4  ;;  %324 = vst [vmem:[#allocation3 + $0x68] sm:$0xf0] %v304_v60  ;;  %v3013_v21 = vsub.f32 %v625_v2, %v2991_v45 }
  0xec   :  { %v2989_v24 = vand.u32 4294901760, %v632_v40  ;;  %325 = vst [vmem:[#allocation3 + $0x18] sm:$0xf0] %v305_v12  ;;  %v1100_v32 = vand.u32 4294901760, %v2998_v49  ;;  %v3027_v25 = vsub.f32 %v623_v57, %v3000_v19  ;;  %v3084_v28 = vsub.f32 %v628_v54, %v3061_v58 }
  0xed   :  { %320 = vst [vmem:[#allocation3 + $0x28] sm:$0xf0] %v316_v23  ;;  %v1106_v51 = vand.u32 4294901760, %v3013_v21  ;;  %v3120_v57 = vsub.f32 %v624_v27, %v3092_v50 }
  0xee   :  { %321 = vst [vmem:[#allocation3 + $0x38] sm:$0xf0] %v317_v17  ;;  %713 = vmatmul.f32.vlgmr.msra.gmra.mxu1 %v2989_v24  ;;  %v2995_v48 = vsub.f32 %v632_v40, %v2989_v24 }
  0xef   :  { %959 = vmatpush.msra.mxu1 %v2821_v34  ;;  %v247_v14 = vpop.permute.xlu0 %246 }
  0xf0   :  { %v250_v16 = vsel %vm243_vm7, %v247_v14, %v249_v7  ;;  %v251_v3 = vsel %vm243_vm7, %v249_v7, %v247_v14  ;;  %745 = vmatmul.f32.vlgmr.msra.gmra.mxu2 %v2995_v48  ;;  %v3010_v53 = vand.u32 4294901760, %v2995_v48 }
  0xf1   :  { %v260_v46 = vmul.f32 %v254_v4, %v251_v3  ;;  %v261_v59 = vmul.f32 %v255_v26, %v250_v16  ;;  %961 = vmatpush.msra.mxu1 %v2827_v38  ;;  %989 = vmatpush.msra.mxu2 %v882_v35  ;;  %v1095_v26 = vsub.f32 %v2987_v22, %v1094_v52  ;;  %v1310_v3 = vand.u32 4294901760, %v3120_v57 }
  0xf2   :  { %773 = vmatmul.f32.vlgmr.msra.gmra.mxu3 %v3010_v53  ;;  %v665_v8 = vsub.f32 %v2995_v48, %v3010_v53 }
  0xf3   :  { %264 = vst [vmem:[#allocation3 + $0x28] sm:$0xf] %v260_v46  ;;  %v276_v4 = vrot.slane %v260_v46, 4  ;;  %v277_v18 = vrot.slane %v261_v59, 4  ;;  %963 = vmatpush.msra.mxu1 %v2858_v6  ;;  %993 = vmatpush.msra.mxu2 %v888_v47  ;;  %v1101_v47 = vsub.f32 %v2998_v49, %v1100_v32  ;;  %v1096_v56 = vand.u32 4294901760, %v1095_v26 }
  0xf4   :  { %265 = vst [vmem:[#allocation3 + $0x38] sm:$0xf] %v261_v59  ;;  %1023 = vmatpush.msra.mxu3 %v2821_v34  ;;  %v666_v35 = vand.u32 4294901760, %v665_v8  ;;  %v1112_v34 = vand.u32 4294901760, %v3027_v25  ;;  %v1311_v26 = vsub.f32 %v3120_v57, %v1310_v3 }
  0xf5   :  { %280 = vst [vmem:[#allocation3 + $0x68] sm:$0xf] %v276_v4  ;;  %965 = vmatpush.msra.mxu1 %v2894_v10  ;;  %997 = vmatpush.msra.mxu2 %v894_v44  ;;  %v3054_v44 = vand.u32 4294901760, %v1049_v55 }
  0xf6   :  { %281 = vst [vmem:[#allocation3 + $0x18] sm:$0xf] %v277_v18  ;;  %1025 = vmatpush.msra.mxu3 %v2827_v38  ;;  %667 = vmatmul.f32.vlgmr.msra.gmra.mxu0 %v666_v35  ;;  %v1107_v38 = vsub.f32 %v3013_v21, %v1106_v51  ;;  %v1113_v5 = vsub.f32 %v3027_v25, %v1112_v34 }
  0xf7   :  { %835 = vmatmul.f32.vlgmr.msrb.gmra.mxu1 %v2989_v24  ;;  %928 = vmatpush.msra.mxu0 %v2856_v62  ;;  %v1102_v62 = vand.u32 4294901760, %v1101_v47  ;;  %v3073_v1 = vsub.f32 %v1049_v55, %v3054_v44 }
  0xf8   :  { %967 = vmatpush.msra.mxu1 %v2869_v41  ;;  %1001 = vmatpush.msra.mxu2 %v900_v39  ;;  %v626_v39 = vld [vmem:[#allocation3 + $0x90] sm:$0xff]  ;;  %v1114_v9 = vand.u32 4294901760, %v1113_v5  ;;  %v1449_v5 = vld [vmem:[#allocation2 + $0x78] sm:$0xff] }
  0xf9   :  { %1027 = vmatpush.msra.mxu3 %v2858_v6  ;;  %865 = vmatmul.f32.vlgmr.msrb.gmra.mxu2 %v666_v35  ;;  %v59_v6 = vld [vmem:[%s3596_s7] sm:$0xff]  ;;  %v1455_v35 = vld [vmem:[#allocation2 + $0x70] sm:$0xf] }
  0xfa   :  { %1097 = vmatpush.msrb.mxu1 %v1096_v56  ;;  %931 = vmatpush.msra.mxu0 %v2863_v20  ;;  %v621_v15 = vld [vmem:[#allocation3 + $0x28] sm:$0xff]  ;;  %v1108_v20 = vand.u32 4294901760, %v1107_v38  ;;  %v1043_v43 = vsel %vm134_vm0, %v59_v6, 0  ;;  %v1471_v47 = vsel %vm634_vm4, %v1455_v35, 0  ;;  %v1453_v38 = vld [vmem:[#allocation2 + $0x98] sm:$0xff] }
  0xfb   :  { %1005 = vmatpush.msra.mxu2 %v906_v0  ;;  %1029 = vmatpush.msra.mxu3 %v2894_v10  ;;  %v3066_v30 = vand.u32 4294901760, %v621_v15  ;;  %v3080_v10 = vand.u32 4294901760, %v626_v39  ;;  %v622_v29 = vld [vmem:[#allocation3 + $0x38] sm:$0xff]  ;;  %v3104_v2 = vand.u32 4294901760, %v1043_v43  ;;  %v3181_v54 = vand.u32 4294901760, %v1471_v47 }
  0xfc   :  { %1103 = vmatpush.msrb.mxu1 %v1102_v62  ;;  %911 = vmatmul.f32.vlgmr.msrb.gmra.mxu3 %v2989_v24  ;;  %v3109_v40 = vand.u32 4294901760, %v622_v29 }
  0xfd   :  { %1140 = vmatpush.msrb.mxu2 %v2987_v22  ;;  %934 = vmatpush.msra.mxu0 %v2867_v36  ;;  %v3078_v0 = vsub.f32 %v621_v15, %v3066_v30  ;;  %v3102_v12 = vsub.f32 %v626_v39, %v3080_v10  ;;  %v3126_v7 = vsub.f32 %v1043_v43, %v3104_v2  ;;  %v1312_v22 = vand.u32 4294901760, %v1311_v26 }
  0xfe   :  { %1031 = vmatpush.msra.mxu3 %v2869_v41  ;;  %1109 = vmatpush.msrb.mxu1 %v1108_v20  ;;  %v224_v37 = vpop.xlane.xlu2 %223  ;;  %v1292_v41 = vand.u32 4294901760, %v3073_v1  ;;  %v3134_v16 = vsub.f32 %v622_v29, %v3109_v40  ;;  %v3226_v39 = vand.u32 4294901760, %v1449_v5  ;;  %v1452_v29 = vld [vmem:[#allocation2 + $0x40] sm:$0xff] }
  0xff   :  { %1143 = vmatpush.msrb.mxu2 %v2998_v49  ;;  %v1118_v36 = vand.u32 4294901760, %v3078_v0  ;;  %937 = vmatpush.msra.mxu0 %v2907_v11  ;;  %v3094_v63 = vadd.f32 1e-08, %v224_v37  ;;  %v1298_v11 = vand.u32 4294901760, %v3084_v28  ;;  %v3151_v33 = vand.u32 4294901760, %v3126_v7 }
 0x100   :  { %1171 = vmatpush.msrb.mxu3 %v2972_v31  ;;  %1115 = vmatpush.msrb.mxu1 %v1114_v9  ;;  %v1293_v23 = vsub.f32 %v3073_v1, %v1292_v41  ;;  %v1316_v4 = vand.u32 4294901760, %v3134_v16  ;;  %v3194_v49 = vsub.f32 %v1471_v47, %v3181_v54 }
 0x101   :  { %1146 = vmatpush.msrb.mxu2 %v3013_v21  ;;  %v1119_v60 = vsub.f32 %v3078_v0, %v1118_v36  ;;  %809 = vmatmul.f32.vlgmr.msrb.gmra.mxu0 %v2989_v24  ;;  %2418 = vrsqrt.f32 %v3094_v63  ;;  %v1299_v14 = vsub.f32 %v3084_v28, %v1298_v11  ;;  %v3196_v21 = vand.u32 4294901760, %v1453_v38 }
 0x102   :  { %1173 = vmatpush.msrb.mxu3 %v2983_v42  ;;  %971 = vmatmul.f32.vlgmr.msra.gmra.mxu1 %v3010_v53  ;;  %vm232_vm13 = vweird.f32 %v3094_v63 }
 0x103   :  { %940 = vmatpush.msra.mxu0 %v2892_v13  ;;  %1149 = vmatpush.msrb.mxu2 %v3027_v25  ;;  %v1120_v17 = vand.u32 4294901760, %v1119_v60  ;;  %v1304_v13 = vand.u32 4294901760, %v3102_v12  ;;  %v1300_v8 = vand.u32 4294901760, %v1299_v14  ;;  %v3215_v25 = vsub.f32 %v1453_v38, %v3196_v21 }
 0x104   :  { %1175 = vmatpush.msrb.mxu3 %v2991_v45  ;;  %1007 = vmatmul.f32.vlgmr.msra.gmra.mxu2 %v2989_v24  ;;  %v2445_v14 = vmov 0  }
 0x105   :  { %1063 = vmatpush.msrb.mxu0 %v2972_v31  ;;  %1033 = vmatmul.f32.vlgmr.msra.gmra.mxu3 %v2989_v24  ;;  %v1294_v24 = vand.u32 4294901760, %v1293_v23  ;;  %v1305_v46 = vsub.f32 %v3102_v12, %v1304_v13  ;;  %v1525_v27 = vand.u32 4294901760, %v3215_v25 }
 0x106   :  { %1152 = vmatpush.msrb.mxu2 %v3078_v0  ;;  %1177 = vmatpush.msrb.mxu3 %v3000_v19 }
 0x107   :  { %1065 = vmatpush.msrb.mxu0 %v2983_v42  ;;  %1121 = vmatpush.msrb.mxu1 %v1120_v17  ;;  %v3140_v53 = vpop.eup %2418  ;;  %v1306_v55 = vand.u32 4294901760, %v1305_v46 }
 0x108   :  { %1261 = vmatpush.msra.mxu2 %v3054_v44  ;;  %1179 = vmatpush.msrb.mxu3 %v3066_v30  ;;  %v227_v59 = vmul.f32 %v3140_v53, %v3094_v63  ;;  %vm233_vm14 = vweird.f32 %v3140_v53  ;;  %v1450_v63 = vld [vmem:[#allocation2 + $0x80] sm:$0xff] }
 0x109   :  { %1067 = vmatpush.msrb.mxu0 %v2991_v45  ;;  %1235 = vmatpush.msra.mxu1 %v2972_v31  ;;  %v1317_v31 = vsub.f32 %v3134_v16, %v1316_v4  ;;  %vm3219_vm15 = vmor %vm232_vm13, %vm233_vm14 }
 0x10a   :  { %1263 = vmatpush.msra.mxu2 %v3061_v58  ;;  %1295 = vmatpush.msra.mxu3 %v1294_v24  ;;  %v228_v18 = vmul.f32 %v3140_v53, %v227_v59 }
 0x10b   :  { %1069 = vmatpush.msrb.mxu0 %v3000_v19  ;;  %1237 = vmatpush.msra.mxu1 %v2983_v42  ;;  %v1318_v42 = vand.u32 4294901760, %v1317_v31 }
 0x10c   :  { %943 = vmatmul.f32.vlgmr.msra.gmra.mxu0 %v2995_v48  ;;  %1265 = vmatpush.msra.mxu2 %v3080_v10  ;;  %v1075_v48 = vsub.f32 %v3126_v7, %v3151_v33  ;;  %v229_v56 = vmul.f32 0.5, %v228_v18 }
 0x10d   :  { %1301 = vmatpush.msra.mxu3 %v1300_v8  ;;  %1071 = vmatpush.msrb.mxu0 %v3066_v30 }
 0x10e   :  { %1155 = vmatmul.f32.vlgmr.msrb.gmra.mxu2 %v3126_v7  ;;  %1123 = vmatmul.f32.vlgmr.msrb.gmra.mxu1 %v3104_v2  ;;  %v230_v62 = vsub.f32 1.5, %v229_v56 }
 0x10f   :  { %1201 = vmatpush.msra.mxu0 %v1094_v52  ;;  %1267 = vmatpush.msra.mxu2 %v3092_v50  ;;  %v3179_v52 = vand.u32 4294901760, %v1075_v48 }
 0x110   :  { %1307 = vmatpush.msra.mxu3 %v1306_v55  ;;  %1239 = vmatpush.msra.mxu1 %v2991_v45  ;;  %v1451_v45 = vld [vmem:[#allocation2 + $0x28] sm:$0xff] }
 0x111   :  { %1183 = vmatmul.f32.vlgmr.msrb.gmra.mxu3 %v3151_v33  ;;  %1205 = vmatpush.msra.mxu0 %v1100_v32  ;;  %v231_v32 = vmul.f32 %v3140_v53, %v230_v62 }
 0x112   :  { %1269 = vmatpush.msra.mxu2 %v3109_v40  ;;  %1313 = vmatpush.msra.mxu3 %v1312_v22 }
 0x113   :  { %1209 = vmatpush.msra.mxu0 %v1106_v51  ;;  %1241 = vmatpush.msra.mxu1 %v3000_v19  ;;  %v1456_v19 = vld [vmem:[#allocation2 + $0x90] sm:$0xf]  ;;  %v3207_v51 = vand.u32 4294901760, %v1451_v45  ;;  %v235_v6 = vsel %vm3219_vm15, %v3140_v53, %v231_v32 }
 0x114   :  { %1399 = vmatpush.msrb.mxu2 %v1292_v41  ;;  %1319 = vmatpush.msra.mxu3 %v1318_v42  ;;  %v1526_v41 = vsub.f32 %v3215_v25, %v1525_v27 }
 0x115   :  { %1077 = vmatmul.f32.vlgmr.msrb.gmra.mxu0 %v3179_v52  ;;  %1243 = vmatpush.msra.mxu1 %v3066_v30  ;;  %v1447_v30 = vld [vmem:[#allocation2 + $0x50] sm:$0xff]  ;;  %v3234_v20 = vsub.f32 %v1451_v45, %v3207_v51 }
 0x116   :  { %1403 = vmatpush.msrb.mxu2 %v1298_v11  ;;  %1433 = vmatpush.msrb.mxu3 %v3054_v44  ;;  %v3247_v9 = vand.u32 4294901760, %v1447_v30  ;;  %v3277_v11 = vand.u32 4294901760, %v1452_v29  ;;  %v1527_v24 = vand.u32 4294901760, %v1526_v41 }
 0x117   :  { %1213 = vmatpush.msra.mxu0 %v1112_v34  ;;  %1369 = vmatpush.msrb.mxu1 %v3054_v44  ;;  %v1519_v34 = vand.u32 4294901760, %v3194_v49  ;;  %v1474_v44 = vsel %vm634_vm4, %v1456_v19, 0  ;;  %v1531_v43 = vand.u32 4294901760, %v3234_v20 }
 0x118   :  { %1407 = vmatpush.msrb.mxu2 %v1304_v13  ;;  %1435 = vmatpush.msrb.mxu3 %v3061_v58  ;;  %v1448_v13 = vld [vmem:[#allocation2 + $0x18] sm:$0xff]  ;;  %v3305_v59 = vsub.f32 %v1452_v29, %v3277_v11 }
 0x119   :  { %1217 = vmatpush.msra.mxu0 %v1118_v36  ;;  %1275 = vmatmul.f32.vlgmr.msra.gmra.mxu2 %v3179_v52  ;;  %v1520_v0 = vsub.f32 %v3194_v49, %v1519_v34  ;;  %v1532_v23 = vsub.f32 %v3234_v20, %v1531_v43  ;;  %v3309_v18 = vand.u32 4294901760, %v1448_v13 }
 0x11a   :  { %1245 = vmatmul.f32.vlgmr.msra.gmra.mxu1 %v3104_v2  ;;  %1411 = vmatpush.msrb.mxu2 %v1310_v3  ;;  %v610_v3 = vld [vmem:[%s3597_s8] sm:$0xff]  ;;  %v1729_v47 = vand.u32 4294901760, %v3305_v59 }
 0x11b   :  { %1338 = vmatpush.msrb.mxu0 %v3073_v1  ;;  %1371 = vmatpush.msrb.mxu1 %v3061_v58  ;;  %v3238_v58 = vand.u32 4294901760, %v1474_v44  ;;  %v1454_v1 = vld [vmem:[#allocation2 + $0x60] sm:$0xff]  ;;  %v1521_v37 = vand.u32 4294901760, %v1520_v0  ;;  %v1533_v8 = vand.u32 4294901760, %v1532_v23  ;;  %v3334_v22 = vsub.f32 %v1448_v13, %v3309_v18  ;;  %v1462_v23 = vld [vmem:[#allocation3 + $0x8] sm:$0xff] }
 0x11c   :  { %1437 = vmatpush.msrb.mxu3 %v3080_v10  ;;  %1415 = vmatpush.msrb.mxu2 %v1316_v4  ;;  %v3258_v36 = vand.u32 4294901760, %v1454_v1  ;;  %v1730_v19 = vsub.f32 %v3305_v59, %v1729_v47 }
 0x11d   :  { %1341 = vmatpush.msrb.mxu0 %v3084_v28  ;;  %1321 = vmatmul.f32.vlgmr.msra.gmra.mxu3 %v3104_v2  ;;  %v236_v28 = vmul.f32 %v235_v6, %v2715_v61  ;;  %v3263_v61 = vsub.f32 %v1474_v44, %v3238_v58 }
 0x11e   :  { %1373 = vmatpush.msrb.mxu1 %v3080_v10  ;;  %1439 = vmatpush.msrb.mxu3 %v3092_v50  ;;  %v3253_v10 = vsub.f32 %v1449_v5, %v3226_v39  ;;  %v3284_v17 = vsub.f32 %v1454_v1, %v3258_v36  ;;  %v1741_v5 = vand.u32 4294901760, %v3334_v22  ;;  %v1731_v6 = vand.u32 4294901760, %v1730_v19 }
 0x11f   :  { %1565 = vmatpush.msra.mxu2 %v3194_v49  ;;  %1344 = vmatpush.msrb.mxu0 %v3102_v12  ;;  %v1468_v12 = vsel %vm134_vm0, %v236_v28, 0  ;;  %v1463_v49 = vld [vmem:[#allocation3 + $0x50] sm:$0xff] }
 0x120   :  { %1375 = vmatpush.msrb.mxu1 %v3092_v50  ;;  %1441 = vmatpush.msrb.mxu3 %v3109_v40  ;;  %v3271_v50 = vsub.f32 %v1447_v30, %v3247_v9  ;;  %v1537_v60 = vand.u32 4294901760, %v3253_v10  ;;  %v3297_v46 = vand.u32 4294901760, %v1468_v12  ;;  %v1723_v4 = vand.u32 4294901760, %v3284_v17  ;;  %v1465_v30 = vld [vmem:[#allocation3 + $0x98] sm:$0xf] }
 0x121   :  { %1219 = vmatmul.f32.vlgmr.msra.gmra.mxu0 %v3104_v2  ;;  %1568 = vmatpush.msra.mxu2 %v3215_v25  ;;  %v1742_v1 = vsub.f32 %v3334_v22, %v1741_v5  ;;  %v1873_v0 = vsel %vm634_vm4, %v1465_v30, 0  ;;  %v1461_v25 = vld [vmem:[#allocation3 + $0x40] sm:$0xff] }
 0x122   :  { %1596 = vmatpush.msra.mxu3 %v3181_v54  ;;  %1347 = vmatpush.msrb.mxu0 %v3120_v57  ;;  %v3289_v57 = vand.u32 4294901760, %v1450_v63  ;;  %v1543_v53 = vand.u32 4294901760, %v3271_v50  ;;  %v3323_v31 = vsub.f32 %v1468_v12, %v3297_v46  ;;  %v1724_v56 = vsub.f32 %v3284_v17, %v1723_v4 }
 0x123   :  { %1377 = vmatpush.msrb.mxu1 %v3109_v40  ;;  %1417 = vmatmul.f32.vlgmr.msrb.gmra.mxu2 %v3104_v2  ;;  %v1717_v40 = vand.u32 4294901760, %v3263_v61 }
 0x124   :  { %1571 = vmatpush.msra.mxu2 %v3234_v20  ;;  %1598 = vmatpush.msra.mxu3 %v3196_v21  ;;  %v3316_v35 = vsub.f32 %v1450_v63, %v3289_v57  ;;  %v1544_v55 = vsub.f32 %v3271_v50, %v1543_v53  ;;  %v3341_v45 = vand.u32 4294901760, %v3323_v31  ;;  %v1725_v32 = vand.u32 4294901760, %v1724_v56  ;;  %v1464_v63 = vld [vmem:[#allocation3 + $0x10] sm:$0xff] }
 0x125   :  { %1522 = vmatpush.msra.mxu1 %v1521_v37  ;;  %1350 = vmatpush.msrb.mxu0 %v3134_v16  ;;  %v1538_v16 = vsub.f32 %v3253_v10, %v1537_v60  ;;  %v1718_v26 = vsub.f32 %v3263_v61, %v1717_v40  ;;  %v1457_v37 = vld [vmem:[#allocation3 + $0x68] sm:$0xff]  ;;  %v3427_v12 = vand.u32 4294901760, %v1464_v63 }
 0x126   :  { %1381 = vmatmul.f32.vlgmr.msrb.gmra.mxu1 %v3151_v33  ;;  %2413 = vset.pattern.permute.xlu0 %v2445_v14  ;;  %v1735_v38 = vand.u32 4294901760, %v3316_v35  ;;  %v1545_v62 = vand.u32 4294901760, %v1544_v55  ;;  %v1500_v15 = vsub.f32 %v3323_v31, %v3341_v45  ;;  %v1458_v55 = vld [vmem:[#allocation3 + $0x18] sm:$0xff] }
 0x127   :  { %1443 = vmatmul.f32.vlgmr.msrb.gmra.mxu3 %v3104_v2  ;;  %1488 = vmatpush.msra.mxu0 %v3181_v54  ;;  %v1539_v48 = vand.u32 4294901760, %v1538_v16  ;;  %v1719_v42 = vand.u32 4294901760, %v1718_v26  ;;  %v3454_v16 = vsub.f32 %v1464_v63, %v3427_v12 }
 0x128   :  { %1528 = vmatpush.msra.mxu1 %v1527_v24  ;;  %1574 = vmatpush.msra.mxu2 %v3253_v10  ;;  %v1736_v44 = vsub.f32 %v3316_v35, %v1735_v38  ;;  %v1501_v28 = vand.u32 4294901760, %v1500_v15 }
 0x129   :  { %1600 = vmatpush.msra.mxu3 %v3207_v51  ;;  %1039 = vperm.xlu0 %2413, %v610_v3   ;;  %v3448_v3 = vand.u32 4294901760, %v1462_v23 }
 0x12a   :  { %1490 = vmatpush.msra.mxu0 %v3196_v21  ;;  %1534 = vmatpush.msra.mxu1 %v1533_v8 }
 0x12b   :  { %1577 = vmatpush.msra.mxu2 %v3271_v50  ;;  %1602 = vmatpush.msra.mxu3 %v3226_v39 }
 0x12c   :  { %1353 = vmatmul.f32.vlgmr.msrb.gmra.mxu0 %v3126_v7  ;;  %1540 = vmatpush.msra.mxu1 %v1539_v48  ;;  %v3469_v48 = vsub.f32 %v1462_v23, %v3448_v3 }
 0x12d   :  { %1686 = vmatpush.msrb.mxu2 %v3238_v58  ;;  %1492 = vmatpush.msra.mxu0 %v3207_v51 }
 0x12e   :  { %1604 = vmatpush.msra.mxu3 %v3247_v9  ;;  %1546 = vmatpush.msra.mxu1 %v1545_v62 }
 0x12f   :  { %1688 = vmatpush.msrb.mxu2 %v3258_v36  ;;  %1494 = vmatpush.msra.mxu0 %v3226_v39 }
 0x130   :  { %1720 = vmatpush.msrb.mxu3 %v1719_v42  ;;  %1580 = vmatmul.f32.vlgmr.msra.gmra.mxu2 %v3323_v31  ;;  %v3478_v42 = vand.u32 4294901760, %v1458_v55 }
 0x131   :  { %1548 = vmatmul.f32.vlgmr.msra.gmra.mxu1 %v3297_v46  ;;  %1690 = vmatpush.msrb.mxu2 %v3277_v11 }
 0x132   :  { %1660 = vmatpush.msrb.mxu1 %v3181_v54  ;;  %1726 = vmatpush.msrb.mxu3 %v1725_v32  ;;  %v1737_v54 = vand.u32 4294901760, %v1736_v44 }
 0x133   :  { %1496 = vmatpush.msra.mxu0 %v3247_v9  ;;  %1608 = vmatmul.f32.vlgmr.msra.gmra.mxu3 %v3341_v45 }
 0x134   :  { %1662 = vmatpush.msrb.mxu1 %v3196_v21  ;;  %1692 = vmatpush.msrb.mxu2 %v3289_v57  ;;  %v1743_v21 = vand.u32 4294901760, %v1742_v1 }
 0x135   :  { %1626 = vmatpush.msrb.mxu0 %v1519_v34  ;;  %1732 = vmatpush.msrb.mxu3 %v1731_v6  ;;  %v3373_v34 = vand.u32 4294901760, %v1873_v0 }
 0x136   :  { %1664 = vmatpush.msrb.mxu1 %v3207_v51  ;;  %1694 = vmatpush.msrb.mxu2 %v3309_v18  ;;  %v3378_v51 = vand.u32 4294901760, %v1463_v49 }
 0x137   :  { %1630 = vmatpush.msrb.mxu0 %v1525_v27  ;;  %1738 = vmatpush.msrb.mxu3 %v1737_v54  ;;  %v1466_v27 = vld [vmem:[#allocation3 + $0x48] sm:$0xf]  ;;  %v3387_v20 = vsub.f32 %v1873_v0, %v3373_v34 }
 0x138   :  { %1502 = vmatmul.f32.vlgmr.msra.gmra.mxu0 %v1501_v28  ;;  %1824 = vmatpush.msra.mxu2 %v1717_v40  ;;  %v3397_v10 = vsub.f32 %v1463_v49, %v3378_v51 }
 0x139   :  { %1634 = vmatpush.msrb.mxu0 %v1531_v43  ;;  %1666 = vmatpush.msrb.mxu1 %v3226_v39  ;;  %v3389_v39 = vand.u32 4294901760, %v1461_v25  ;;  %v1459_v43 = vld [vmem:[#allocation3] sm:$0xff] }
 0x13a   :  { %1744 = vmatpush.msrb.mxu3 %v1743_v21  ;;  %1700 = vmatmul.f32.vlgmr.msrb.gmra.mxu2 %v1501_v28  ;;  %v3403_v29 = vand.u32 4294901760, %v1459_v43 }
 0x13b   :  { %1828 = vmatpush.msra.mxu2 %v1723_v4  ;;  %1638 = vmatpush.msrb.mxu0 %v1537_v60  ;;  %v3409_v41 = vsub.f32 %v1461_v25, %v3389_v39 }
 0x13c   :  { %1858 = vmatpush.msra.mxu3 %v3238_v58  ;;  %1668 = vmatpush.msrb.mxu1 %v3247_v9  ;;  %v1876_v9 = vsel %vm634_vm4, %v1466_v27, 0  ;;  %v3425_v60 = vsub.f32 %v1459_v43, %v3403_v29 }
 0x13d   :  { %1670 = vmatmul.f32.vlgmr.msrb.gmra.mxu1 %v3297_v46  ;;  %1746 = vmatmul.f32.vlgmr.msrb.gmra.mxu3 %v3297_v46  ;;  %v3414_v50 = vand.u32 4294901760, %v1876_v9  ;;  %v1933_v40 = vand.u32 4294901760, %v3409_v41 }
 0x13e   :  { %1794 = vmatpush.msra.mxu1 %v3238_v58  ;;  %1832 = vmatpush.msra.mxu2 %v1729_v47  ;;  %v1921_v58 = vand.u32 4294901760, %v3387_v20  ;;  %v2125_v47 = vand.u32 4294901760, %v3454_v16 }
 0x13f   :  { %1860 = vmatpush.msra.mxu3 %v3258_v36  ;;  %1642 = vmatpush.msrb.mxu0 %v1543_v53  ;;  %v1460_v53 = vld [vmem:[#allocation3 + $0x20] sm:$0xff]  ;;  %v1934_v8 = vsub.f32 %v3409_v41, %v1933_v40 }
 0x140   :  { %1796 = vmatpush.msra.mxu1 %v3258_v36  ;;  %1836 = vmatpush.msra.mxu2 %v1735_v38  ;;  %v3419_v36 = vand.u32 4294901760, %v1457_v37  ;;  %v3464_v26 = vand.u32 4294901760, %v1460_v53  ;;  %v2126_v32 = vsub.f32 %v3454_v16, %v2125_v47 }
 0x141   :  { %1763 = vmatpush.msra.mxu0 %v3263_v61  ;;  %1862 = vmatpush.msra.mxu3 %v3277_v11  ;;  %v1927_v61 = vand.u32 4294901760, %v3397_v10  ;;  %v1935_v56 = vand.u32 4294901760, %v1934_v8 }
 0x142   :  { %1644 = vmatmul.f32.vlgmr.msrb.gmra.mxu0 %v3297_v46  ;;  %1798 = vmatpush.msra.mxu1 %v3277_v11  ;;  %v1922_v11 = vsub.f32 %v3387_v20, %v1921_v58  ;;  %v3446_v24 = vsub.f32 %v1457_v37, %v3419_v36  ;;  %v2127_v6 = vand.u32 4294901760, %v2126_v32 }
 0x143   :  { %1766 = vmatpush.msra.mxu0 %v3284_v17  ;;  %1840 = vmatpush.msra.mxu2 %v1741_v5  ;;  %v3438_v17 = vsub.f32 %v1876_v9, %v3414_v50  ;;  %v1928_v13 = vsub.f32 %v3397_v10, %v1927_v61 }
 0x144   :  { %1864 = vmatpush.msra.mxu3 %v3289_v57  ;;  %1800 = vmatpush.msra.mxu1 %v3289_v57  ;;  %v1939_v57 = vand.u32 4294901760, %v3425_v60 }
 0x145   :  { %1967 = vmatpush.msrb.mxu2 %v3387_v20  ;;  %1769 = vmatpush.msra.mxu0 %v3305_v59  ;;  %v1923_v59 = vand.u32 4294901760, %v1922_v11  ;;  %v2119_v4 = vand.u32 4294901760, %v3438_v17 }
 0x146   :  { %1842 = vmatmul.f32.vlgmr.msra.gmra.mxu2 %v3297_v46  ;;  %1866 = vmatpush.msra.mxu3 %v3309_v18 }
 0x147   :  { %1970 = vmatpush.msrb.mxu2 %v3397_v10  ;;  %1772 = vmatpush.msra.mxu0 %v3316_v35  ;;  %v1929_v35 = vand.u32 4294901760, %v1928_v13  ;;  %v2120_v38 = vsub.f32 %v3438_v17, %v2119_v4 }
 0x148   :  { %1998 = vmatpush.msrb.mxu3 %v3373_v34  ;;  %1802 = vmatpush.msra.mxu1 %v3309_v18  ;;  %v1945_v18 = vand.u32 4294901760, %v3446_v24 }
 0x149   :  { %1868 = vmatmul.f32.vlgmr.msra.gmra.mxu3 %v3297_v46  ;;  %1806 = vmatmul.f32.vlgmr.msra.gmra.mxu1 %v3341_v45  ;;  %v1940_v46 = vsub.f32 %v3425_v60, %v1939_v57  ;;  %v2131_v45 = vand.u32 4294901760, %v3469_v48  ;;  %v2121_v5 = vand.u32 4294901760, %v2120_v38 }
 0x14a   :  { %1924 = vmatpush.msrb.mxu1 %v1923_v59  ;;  %1973 = vmatpush.msrb.mxu2 %v3409_v41  ;;  %v1946_v62 = vsub.f32 %v3446_v24, %v1945_v18 }
 0x14b   :  { %2000 = vmatpush.msrb.mxu3 %v3378_v51  ;;  %1775 = vmatpush.msra.mxu0 %v3334_v22  ;;  %v3484_v22 = vsub.f32 %v1460_v53, %v3464_v26  ;;  %v1941_v19 = vand.u32 4294901760, %v1940_v46  ;;  %v2132_v30 = vsub.f32 %v3469_v48, %v2131_v45 }
 0x14c   :  { %1930 = vmatpush.msrb.mxu1 %v1929_v35  ;;  %1976 = vmatpush.msrb.mxu2 %v3425_v60  ;;  %v1947_v15 = vand.u32 4294901760, %v1946_v62 }
 0x14d   :  { %1890 = vmatpush.msrb.mxu0 %v3373_v34  ;;  %2002 = vmatpush.msrb.mxu3 %v3389_v39  ;;  %v2137_v44 = vand.u32 4294901760, %v3484_v22  ;;  %v2133_v0 = vand.u32 4294901760, %v2132_v30 }
 0x14e   :  { %1778 = vmatmul.f32.vlgmr.msra.gmra.mxu0 %v3323_v31  ;;  %1936 = vmatpush.msrb.mxu1 %v1935_v56  ;;  %v3497_v31 = vsub.f32 %v1458_v55, %v3478_v42 }
 0x14f   :  { %1892 = vmatpush.msrb.mxu0 %v3378_v51  ;;  %1979 = vmatpush.msrb.mxu2 %v3446_v24  ;;  %v2138_v54 = vsub.f32 %v3484_v22, %v2137_v44 }
 0x150   :  { %2004 = vmatpush.msrb.mxu3 %v3403_v29  ;;  %1942 = vmatpush.msrb.mxu1 %v1941_v19  ;;  %v2143_v1 = vand.u32 4294901760, %v3497_v31 }
 0x151   :  { %2088 = vmatpush.msra.mxu2 %v3414_v50  ;;  %1894 = vmatpush.msrb.mxu0 %v3389_v39  ;;  %v2139_v49 = vand.u32 4294901760, %v2138_v54 }
 0x152   :  { %2006 = vmatpush.msrb.mxu3 %v3419_v36  ;;  %1948 = vmatpush.msrb.mxu1 %v1947_v15  ;;  %v2144_v28 = vsub.f32 %v3497_v31, %v2143_v1 }
 0x153   :  { %2090 = vmatpush.msra.mxu2 %v3427_v12  ;;  %1896 = vmatpush.msrb.mxu0 %v3403_v29 }
 0x154   :  { %2122 = vmatpush.msra.mxu3 %v2121_v5  ;;  %2062 = vmatpush.msra.mxu1 %v3373_v34  ;;  %v2145_v21 = vand.u32 4294901760, %v2144_v28 }
 0x155   :  { %2092 = vmatpush.msra.mxu2 %v3448_v3  ;;  %1898 = vmatpush.msrb.mxu0 %v3419_v36 }
 0x156   :  { %2128 = vmatpush.msra.mxu3 %v2127_v6  ;;  %1982 = vmatmul.f32.vlgmr.msrb.gmra.mxu2 %v3126_v7 }
 0x157   :  { %2028 = vmatpush.msra.mxu0 %v1921_v58  ;;  %2064 = vmatpush.msra.mxu1 %v3378_v51 }
 0x158   :  { %2094 = vmatpush.msra.mxu2 %v3464_v26  ;;  %2134 = vmatpush.msra.mxu3 %v2133_v0 }
 0x159   :  { %1904 = vmatmul.f32.vlgmr.msrb.gmra.mxu0 %v3179_v52  ;;  %2010 = vmatmul.f32.vlgmr.msrb.gmra.mxu3 %v3151_v33 }
 0x15a   :  { %2032 = vmatpush.msra.mxu0 %v1927_v61  ;;  %2066 = vmatpush.msra.mxu1 %v3389_v39 }
 0x15b   :  { %2096 = vmatpush.msra.mxu2 %v3478_v42  ;;  %2140 = vmatpush.msra.mxu3 %v2139_v49 }
 0x15c   :  { %1950 = vmatmul.f32.vlgmr.msrb.gmra.mxu1 %v3104_v2  ;;  %2036 = vmatpush.msra.mxu0 %v1933_v40 }
 0x15d   :  { %2226 = vmatpush.msrb.mxu2 %v2119_v4  ;;  %2068 = vmatpush.msra.mxu1 %v3403_v29 }
 0x15e   :  { %2146 = vmatpush.msra.mxu3 %v2145_v21  ;;  %2040 = vmatpush.msra.mxu0 %v1939_v57 }
 0x15f   :  { %2230 = vmatpush.msrb.mxu2 %v2125_v47  ;;  %2070 = vmatpush.msra.mxu1 %v3419_v36 }
 0x160   :  { %2260 = vmatpush.msrb.mxu3 %v3414_v50  ;;  %2044 = vmatpush.msra.mxu0 %v1945_v18 }
 0x161   :  { %2234 = vmatpush.msrb.mxu2 %v2131_v45  ;;  %2196 = vmatpush.msrb.mxu1 %v3414_v50 }
 0x162   :  { %2262 = vmatpush.msrb.mxu3 %v3427_v12  ;;  %2102 = vmatmul.f32.vlgmr.msra.gmra.mxu2 %v3179_v52 }
 0x163   :  { %2165 = vmatpush.msrb.mxu0 %v3438_v17  ;;  %2198 = vmatpush.msrb.mxu1 %v3427_v12 }
 0x164   :  { %2238 = vmatpush.msrb.mxu2 %v2137_v44  ;;  %2264 = vmatpush.msrb.mxu3 %v3448_v3 }
 0x165   :  { %2046 = vmatmul.f32.vlgmr.msra.gmra.mxu0 %v3104_v2  ;;  %2148 = vmatmul.f32.vlgmr.msra.gmra.mxu3 %v3104_v2 }
 0x166   :  { %2168 = vmatpush.msrb.mxu0 %v3454_v16  ;;  %2200 = vmatpush.msrb.mxu1 %v3448_v3 }
 0x167   :  { %2242 = vmatpush.msrb.mxu2 %v2143_v1  ;;  %2266 = vmatpush.msrb.mxu3 %v3464_v26 }
 0x168   :  { %2072 = vmatmul.f32.vlgmr.msra.gmra.mxu1 %v3104_v2  ;;  %2171 = vmatpush.msrb.mxu0 %v3469_v48 }
 0x169   :  { %2202 = vmatpush.msrb.mxu1 %v3464_v26  ;;  %2268 = vmatpush.msrb.mxu3 %v3478_v42 }
 0x16a   :  { %2174 = vmatpush.msrb.mxu0 %v3484_v22  ;;  %2244 = vmatmul.f32.vlgmr.msrb.gmra.mxu2 %v3104_v2 }
 0x16b   :  { %2204 = vmatpush.msrb.mxu1 %v3478_v42  ;;  %2414 = vset.pattern.permute.xlu1 %v2445_v14  ;;  %v714_v52 = vpop.f32.mrf.mxu1 }
 0x16c   :  { %2177 = vmatpush.msrb.mxu0 %v3497_v31  ;;  %2415 = vset.pattern.permute.xlu2 %v2445_v14 }
 0x16d   :  { %2180 = vmatmul.f32.vlgmr.msrb.gmra.mxu0 %v3126_v7  ;;  %2270 = vmatmul.f32.vlgmr.msrb.gmra.mxu3 %v3104_v2 }
 0x170   :  { %2208 = vmatmul.f32.vlgmr.msrb.gmra.mxu1 %v3151_v33 }
 0x173   :  { %v668_v34 = vpop.f32.mrf.mxu0  ;;  %v746_v51 = vpop.f32.mrf.mxu2 }
 0x174   :  { %v715_v25 = vadd.f32 %v714_v52, %v668_v34  ;;  %v836_v43 = vpop.f32.mrf.mxu1 }
 0x175   :  { %v774_v20 = vpop.f32.mrf.mxu3 }
 0x176   :  { %v747_v27 = vadd.f32 %v746_v51, %v715_v25 }
 0x178   :  { %v775_v39 = vadd.f32 %v774_v20, %v747_v27 }
 0x17c   :  { %v866_v29 = vpop.f32.mrf.mxu2 }
 0x17e   :  { %v810_v10 = vpop.f32.mrf.mxu0 }
 0x17f   :  { %v811_v9 = vadd.f32 %v810_v10, %v775_v39  ;;  %v912_v37 = vpop.f32.mrf.mxu3  ;;  %v972_v2 = vpop.f32.mrf.mxu1 }
 0x180   :  { %v913_v58 = vadd.f32 %v912_v37, %v866_v29 }
 0x181   :  { %v3556_v14 = vadd.f32 %v836_v43, %v811_v9 }
 0x187   :  { %v1008_v33 = vpop.f32.mrf.mxu2 }
 0x188   :  { %v1034_v61 = vpop.f32.mrf.mxu3 }
 0x189   :  { %v944_v7 = vpop.f32.mrf.mxu0 }
 0x18a   :  { %v945_v41 = vadd.f32 %v944_v7, %v913_v58 }
 0x18b   :  { %v1124_v12 = vpop.f32.mrf.mxu1 }
 0x18c   :  { %v973_v63 = vadd.f32 %v972_v2, %v945_v41 }
 0x18e   :  { %v1009_v50 = vadd.f32 %v1008_v33, %v973_v63 }
 0x190   :  { %v3558_v36 = vadd.f32 %v1034_v61, %v1009_v50 }
 0x191   :  { %v1156_v23 = vpop.f32.mrf.mxu2 }
 0x192   :  { %v1078_v60 = vpop.f32.mrf.mxu0 }
 0x194   :  { %v1184_v11 = vpop.f32.mrf.mxu3 }
 0x197   :  { %v1246_v3 = vpop.f32.mrf.mxu1 }
 0x19b   :  { %v1040_v40 = vpop.permute.xlu0 %1039 }
 0x19c   :  { %v1079_v17 = vadd.f32 %v1078_v60, %v1040_v40  ;;  %v1276_v53 = vpop.f32.mrf.mxu2 }
 0x19d   :  { %v1277_v57 = vadd.f32 %v1276_v53, %v1040_v40 }
 0x19e   :  { %v1220_v13 = vpop.f32.mrf.mxu0  ;;  %v1125_v24 = vadd.f32 %v1124_v12, %v1079_v17 }
 0x1a0   :  { %v1322_v16 = vpop.f32.mrf.mxu3  ;;  %v1157_v59 = vadd.f32 %v1156_v23, %v1125_v24 }
 0x1a1   :  { %v1323_v8 = vadd.f32 %v1322_v16, %v1277_v57 }
 0x1a2   :  { %v1185_v4 = vadd.f32 %v1184_v11, %v1157_v59  ;;  %v2314_v59 = vld [vmem:[%s3600_s11] sm:$0xff] }
 0x1a3   :  { %v1382_v35 = vpop.f32.mrf.mxu1 }
 0x1a4   :  { %v1221_v18 = vadd.f32 %v1220_v13, %v1185_v4 }
 0x1a6   :  { %v1418_v46 = vpop.f32.mrf.mxu2  ;;  %v1247_v42 = vadd.f32 %v1246_v3, %v1221_v18 }
 0x1a9   :  { %v1354_v26 = vpop.f32.mrf.mxu0 }
 0x1aa   :  { %v1355_v55 = vadd.f32 %v1354_v26, %v1323_v8  ;;  %v1444_v47 = vpop.f32.mrf.mxu3 }
 0x1ac   :  { %v1383_v48 = vadd.f32 %v1382_v35, %v1355_v55 }
 0x1ae   :  { %v1419_v56 = vadd.f32 %v1418_v46, %v1383_v48  ;;  %v1549_v62 = vpop.f32.mrf.mxu1 }
 0x1b0   :  { %v1445_v38 = vadd.f32 %v1444_v47, %v1419_v56 }
 0x1b2   :  { %v2274_v22 = vadd.f32 %v1445_v38, %v1247_v42 }
 0x1b3   :  { %v1581_v32 = vpop.f32.mrf.mxu2 }
 0x1b4   :  { %2275 = vadd.xlane.f32.xlu1 %v2274_v22 }
 0x1b5   :  { %v1503_v45 = vpop.f32.mrf.mxu0 }
 0x1b6   :  { %v1550_v19 = vadd.f32 %v1549_v62, %v1503_v45  ;;  %v1609_v31 = vpop.f32.mrf.mxu3 }
 0x1b8   :  { %v1582_v5 = vadd.f32 %v1581_v32, %v1550_v19 }
 0x1ba   :  { %v1610_v44 = vadd.f32 %v1609_v31, %v1582_v5  ;;  %v1671_v54 = vpop.f32.mrf.mxu1 }
 0x1bd   :  { %v1701_v6 = vpop.f32.mrf.mxu2 }
 0x1bf   :  { %v1645_v15 = vpop.f32.mrf.mxu0 }
 0x1c0   :  { %v1646_v30 = vadd.f32 %v1645_v15, %v1610_v44  ;;  %v1747_v1 = vpop.f32.mrf.mxu3  ;;  %v2313_v44 = vld [vmem:[%s3599_s10] sm:$0xff] }
 0x1c1   :  { %v1748_v0 = vadd.f32 %v1747_v1, %v1701_v6 }
 0x1c2   :  { %v3560_v28 = vadd.f32 %v1671_v54, %v1646_v30 }
 0x1c6   :  { %v1807_v52 = vpop.f32.mrf.mxu1 }
 0x1c9   :  { %v1843_v25 = vpop.f32.mrf.mxu2 }
 0x1cb   :  { %v1779_v49 = vpop.f32.mrf.mxu0 }
 0x1cc   :  { %v1780_v21 = vadd.f32 %v1779_v49, %v1748_v0  ;;  %v1869_v27 = vpop.f32.mrf.mxu3  ;;  %v2311_v0 = vld [vmem:[%s3598_s9] sm:$0xff] }
 0x1ce   :  { %v1808_v34 = vadd.f32 %v1807_v52, %v1780_v21  ;;  %v2340_v52 = vsub.f32 1.0, %v2314_v59 }
 0x1d0   :  { %v1844_v51 = vadd.f32 %v1843_v25, %v1808_v34 }
 0x1d2   :  { %v3562_v20 = vadd.f32 %v1869_v27, %v1844_v51 }
 0x1d6   :  { %v1905_v39 = vpop.f32.mrf.mxu0 }
 0x1d7   :  { %v1906_v9 = vadd.f32 %v1905_v39, %v1040_v40 }
 0x1d9   :  { %v1951_v43 = vpop.f32.mrf.mxu1  ;;  %v1983_v10 = vpop.f32.mrf.mxu2 }
 0x1da   :  { %v1952_v37 = vadd.f32 %v1951_v43, %v1906_v9 }
 0x1dc   :  { %v2011_v29 = vpop.f32.mrf.mxu3  ;;  %v1984_v2 = vadd.f32 %v1983_v10, %v1952_v37 }
 0x1de   :  { %v2012_v61 = vadd.f32 %v2011_v29, %v1984_v2 }
 0x1e2   :  { %v2047_v58 = vpop.f32.mrf.mxu0 }
 0x1e3   :  { %v2048_v17 = vadd.f32 %v2047_v58, %v2012_v61 }
 0x1e5   :  { %v2073_v7 = vpop.f32.mrf.mxu1  ;;  %v2103_v41 = vpop.f32.mrf.mxu2 }
 0x1e6   :  { %v2104_v63 = vadd.f32 %v2103_v41, %v1040_v40  ;;  %v2074_v53 = vadd.f32 %v2073_v7, %v2048_v17 }
 0x1e8   :  { %v2149_v33 = vpop.f32.mrf.mxu3 }
 0x1e9   :  { %v2150_v50 = vadd.f32 %v2149_v33, %v2104_v63 }
 0x1ea   :  { %v2181_v60 = vpop.f32.mrf.mxu0 }
 0x1eb   :  { %v2182_v12 = vadd.f32 %v2181_v60, %v2150_v50 }
 0x1ed   :  { %v2209_v23 = vpop.f32.mrf.mxu1  ;;  %v2245_v11 = vpop.f32.mrf.mxu2 }
 0x1ee   :  { %v2210_v13 = vadd.f32 %v2209_v23, %v2182_v12 }
 0x1f0   :  { %v2246_v24 = vadd.f32 %v2245_v11, %v2210_v13  ;;  %v2271_v3 = vpop.f32.mrf.mxu3 }
 0x1f2   :  { %v2272_v57 = vadd.f32 %v2271_v3, %v2246_v24 }
 0x1f4   :  { %v2278_v16 = vadd.f32 %v2272_v57, %v2074_v53 }
 0x1f6   :  { %2279 = vadd.xlane.f32.xlu0 %v2278_v16 }
 0x20a   :  { %2335 = vperm.xlu0 %2413, %v2314_v59  }
 0x227   :  { %v2276_v40 = vpop.xlane.xlu1 %2275 }
 0x269   :  { %v2280_v8 = vpop.xlane.xlu0 %2279 }
 0x26a   :  { %v2281_v4 = vadd.f32 %v2280_v8, %v2276_v40 }
 0x26c   :  { %v2282_v26 = vmul.f32 0.001953125, %v2281_v4 }
 0x26e   :  { %v2283_v55 = vsub.f32 %v1247_v42, %v2282_v26  ;;  %v2284_v35 = vsub.f32 %v1445_v38, %v2282_v26  ;;  %v2285_v47 = vsub.f32 %v2074_v53, %v2282_v26  ;;  %v2286_v56 = vsub.f32 %v2272_v57, %v2282_v26 }
 0x270   :  { %v2287_v18 = vmul.f32 %v2283_v55, %v2283_v55  ;;  %v2288_v48 = vmul.f32 %v2284_v35, %v2284_v35  ;;  %v2293_v22 = vmul.f32 %v2285_v47, %v2285_v47  ;;  %v2294_v62 = vmul.f32 %v2286_v56, %v2286_v56 }
 0x272   :  { %v2289_v46 = vadd.f32 %v2288_v48, %v2287_v18  ;;  %v2295_v45 = vadd.f32 %v2294_v62, %v2293_v22 }
 0x274   :  { %2290 = vadd.xlane.f32.xlu2 %v2289_v46 }
 0x27c   :  { %2296 = vadd.xlane.f32.xlu2 %v2295_v45  ;;  %v2336_v58 = vpop.permute.xlu0 %2335 }
 0x27d   :  { %v2338_v60 = vmul.f32 %v2336_v58, %v3556_v14  ;;  %v2339_v12 = vmul.f32 %v2336_v58, %v3558_v36  ;;  %v2364_v17 = vmul.f32 %v2336_v58, %v3560_v28  ;;  %v2365_v53 = vmul.f32 %v2336_v58, %v3562_v20 }
 0x294   :  { %2324 = vperm.xlu2 %2415, %v2313_v44  }
 0x2e7   :  { %v2291_v19 = vpop.xlane.xlu2 %2290 }
 0x2ef   :  { %v2297_v32 = vpop.xlane.xlu2 %2296 }
 0x2f0   :  { %v2298_v31 = vadd.f32 %v2297_v32, %v2291_v19 }
 0x2f2   :  { %v2299_v5 = vmul.f32 0.001953125, %v2298_v31 }
 0x2f4   :  { %v2300_v42 = vadd.f32 1e-05, %v2299_v5 }
 0x2f6   :  { %2420 = vrsqrt.f32 %v2300_v42  ;;  %vm2307_vm1 = vweird.f32 %v2300_v42 }
 0x2f7   :  { %v2325_v25 = vpop.permute.xlu2 %2324 }
 0x2fc   :  { %v2421_v38 = vpop.eup %2420 }
 0x2fd   :  { %v2302_v15 = vmul.f32 %v2421_v38, %v2300_v42  ;;  %vm2308_vm0 = vweird.f32 %v2421_v38 }
 0x2fe   :  { %vm2309_vm2 = vmor %vm2307_vm1, %vm2308_vm0 }
 0x2ff   :  { %v2303_v30 = vmul.f32 %v2421_v38, %v2302_v15 }
 0x301   :  { %v2304_v6 = vmul.f32 0.5, %v2303_v30 }
 0x303   :  { %v2305_v1 = vsub.f32 1.5, %v2304_v6 }
 0x305   :  { %v2306_v54 = vmul.f32 %v2421_v38, %v2305_v1 }
 0x307   :  { %v2310_v49 = vsel %vm2309_vm2, %v2421_v38, %v2306_v54 }
 0x308   :  { %v2312_v21 = vmul.f32 %v2311_v0, %v2310_v49 }
 0x30a   :  { %2317 = vperm.xlu1 %2414, %v2312_v21  }
 0x312   :  { %2343 = vperm.xlu1 %2414, %v2340_v52  }
 0x37c   :  { %v2318_v34 = vpop.permute.xlu1 %2317 }
 0x37d   :  { %v2320_v51 = vmul.f32 %v2318_v34, %v2283_v55  ;;  %v2321_v27 = vmul.f32 %v2318_v34, %v2284_v35  ;;  %v2356_v39 = vmul.f32 %v2318_v34, %v2285_v47  ;;  %v2357_v43 = vmul.f32 %v2318_v34, %v2286_v56 }
 0x37f   :  { %v2327_v10 = vadd.f32 %v2325_v25, %v2320_v51  ;;  %v2328_v9 = vadd.f32 %v2325_v25, %v2321_v27  ;;  %v2358_v29 = vadd.f32 %v2356_v39, %v2325_v25  ;;  %v2359_v37 = vadd.f32 %v2357_v43, %v2325_v25 }
 0x381   :  { %v2329_v7 = vmul.f32 0.2, %v2327_v10  ;;  %v2330_v41 = vmul.f32 0.2, %v2328_v9  ;;  %v2360_v2 = vmul.f32 0.2, %v2358_v29 }
 0x382   :  { %v2361_v63 = vmul.f32 0.2, %v2359_v37 }
 0x383   :  { %v2331_v33 = vmax.f32 %v2327_v10, %v2329_v7  ;;  %v2332_v50 = vmax.f32 %v2328_v9, %v2330_v41  ;;  %v2362_v61 = vmax.f32 %v2358_v29, %v2360_v2 }
 0x384   :  { %v2344_v23 = vpop.permute.xlu1 %2343  ;;  %v2363_v11 = vmax.f32 %v2359_v37, %v2361_v63 }
 0x385   :  { %v2346_v13 = vmul.f32 %v2344_v23, %v2331_v33  ;;  %v2347_v24 = vmul.f32 %v2344_v23, %v2332_v50  ;;  %v2366_v3 = vmul.f32 %v2362_v61, %v2344_v23 }
 0x386   :  { %v2367_v57 = vmul.f32 %v2363_v11, %v2344_v23 }
 0x387   :  { %v2348_v16 = vadd.f32 %v2346_v13, %v2338_v60  ;;  %v2349_v59 = vadd.f32 %v2347_v24, %v2339_v12  ;;  %v2368_v40 = vadd.f32 %v2366_v3, %v2364_v17 }
 0x388   :  { %v2369_v8 = vadd.f32 %v2367_v57, %v2365_v53 }
 0x389   :  { %v2350_v4 = vmul.f32 0.2, %v2348_v16  ;;  %v2351_v26 = vmul.f32 0.2, %v2349_v59  ;;  %v2370_v55 = vmul.f32 0.2, %v2368_v40 }
 0x38a   :  { %v2371_v14 = vmul.f32 0.2, %v2369_v8 }
 0x38b   :  { %v2352_v35 = vmax.f32 %v2348_v16, %v2350_v4  ;;  %v2353_v36 = vmax.f32 %v2349_v59, %v2351_v26  ;;  %v2372_v18 = vmax.f32 %v2368_v40, %v2370_v55 }
 0x38c   :  { %v2373_v48 = vmax.f32 %v2369_v8, %v2371_v14 }
 0x38d   :  { %2354 = vst [vmem:[%s3601_s12] sm:$0xff] %v2352_v35 }
 0x38e   :  { %2355 = vst [vmem:[%s3601_s12 + $0x8] sm:$0xff] %v2353_v36 }
 0x38f   :  { %2374 = vst [vmem:[%s3601_s12 + $0x10] sm:$0xff] %v2372_v18 }
 0x390   :  { %2375 = vst [vmem:[%s3601_s12 + $0x18] sm:$0xff] %v2373_v48 }
 0x391   :  { %2380 = vsyncpa [#allocation5], 1 }

</bundles_post_ra>
